<compile_context>
chip_gen: v6e
topology: v6e:2x2x1
jax: 0.10.0
libtpu: 0.0.40
codegen_flags: <defaults>
</compile_context>

<pallas_src>
import jax
import jax.numpy as jnp
from jax.experimental import pallas as pl
from jax.experimental.pallas import tpu as pltpu


# ----------------------------------------------------------------------------
# Kernels
# ----------------------------------------------------------------------------
def _fused_sage_layers_kernel(adj_ref, xsrc_ref, xdst_ref, w_ref, b_ref,
                              out_ref, sum_acc, max_acc, deg_acc):
    l = pl.program_id(1)          # layer index
    s = pl.program_id(2)          # src-tile index (reduction axis)
    n_s = pl.num_programs(2)

    @pl.when(s == 0)
    def _init():
        sum_acc[...] = jnp.zeros_like(sum_acc)
        max_acc[...] = jnp.full_like(max_acc, -jnp.inf)
        deg_acc[...] = jnp.zeros_like(deg_acc)

    # Layers > 0 consume relu(x) of the ORIGINAL features (the reference
    # re-feeds relu(x), never the conv outputs; relu is idempotent so a single
    # max against the threshold is exact).  max(x, -inf) == x for layer 0.
    relu_thresh = jnp.where(l > 0, jnp.float32(0.0), jnp.float32(-jnp.inf))

    adj = adj_ref[0].astype(jnp.float32)              # (td, ts), exact 0/1
    x_src = jnp.maximum(xsrc_ref[...], relu_thresh)   # fused inter-layer ReLU

    # ---- mean path: partial neighbor sums on the MXU ----
    sum_acc[...] += jnp.dot(adj, x_src, preferred_element_type=jnp.float32)
    # degree accumulation (tiny vs. the masked max below; at very large tiles
    # this could move to the MXU as adj @ ones to keep the XLU completely free)
    deg_acc[...] += jnp.sum(adj, axis=1, keepdims=True)

    # ---- max path: masked running max; only a (td, ts, C) slab per step ----
    masked = jnp.where(adj[:, :, None] > 0.0, x_src[None, :, :],
                       jnp.float32(-jnp.inf))
    max_acc[...] = jnp.maximum(max_acc[...], jnp.max(masked, axis=1))

    # ---- finalize on the last src tile ----
    @pl.when(s == n_s - 1)
    def _finalize():
        deg = deg_acc[...]                                            # (td, 1)
        inv_deg = pl.reciprocal(jnp.maximum(deg, 1.0), approx=True)   # EUP, ~free
        agg_mean = sum_acc[...] * inv_deg
        agg_max = jnp.where(deg > 0.0, max_acc[...], 0.0)             # isolated -> 0
        x_dst = jnp.maximum(xdst_ref[...], relu_thresh)               # (td, C)

        # One fused (td, 3C) @ (3C, 2H) matmul replaces the four narrow
        # SAGEConv linears; the output block is lane-dense (2H multiple of 128)
        # and lands directly in this layer's column slice of the concat buffer.
        feats = jnp.concatenate([agg_mean, agg_max, x_dst], axis=-1)
        out = (jnp.dot(feats, w_ref[0], preferred_element_type=jnp.float32)
               + b_ref[0])
        out_ref[...] = out.astype(out_ref.dtype)


def _post_mp_kernel(h_ref, wp_ref, bp_ref, out_ref):
    """post_mp Linear (output padded to 128 lanes) + log_softmax."""
    logits = (jnp.dot(h_ref[...], wp_ref[...], preferred_element_type=jnp.float32)
              + bp_ref[...])
    m = jnp.max(logits, axis=-1, keepdims=True)
    lse = m + jnp.log(jnp.sum(jnp.exp(logits - m), axis=-1, keepdims=True))
    out_ref[...] = (logits - lse).astype(out_ref.dtype)


# ----------------------------------------------------------------------------
# Wrappers around pallas_call
# ----------------------------------------------------------------------------
def _pick_tile(n, cap, quantum):
    """Largest tile <= cap dividing n (preferring multiples of `quantum`)."""
    if n <= cap:
        return n
    t = (cap // quantum) * quantum
    while t >= quantum:
        if n % t == 0:
            return t
        t -= quantum
    for t in range(cap, 0, -1):
        if n % t == 0:
            return t
    return n


def fused_sage_layers(adj_stack, x, w_stack, b_stack):
    """All GraphSAGE layers in one pallas_call; returns the (Nd, L*2H) concat slab."""
    num_layers, n_dst, n_src = adj_stack.shape
    c_in = x.shape[-1]
    h2 = w_stack.shape[-1]                     # 2 * hidden
    assert w_stack.shape == (num_layers, 3 * c_in, h2)
    if num_layers > 1 and h2 % 128 != 0:
        raise ValueError("2*hidden_channels must be a multiple of 128 for the "
                         "lane-dense packed-concat output layout.")

    td = _pick_tile(n_dst, 256, 8)
    # Bound the per-step (td, ts, C) masked-max slab to ~8 MiB of VMEM.
    slab_cap = max(128, ((8 * 1024 * 1024) // max(td * c_in * 4, 1)) // 128 * 128)
    ts = _pick_tile(n_src, min(512, slab_cap), 128)
    grid = (n_dst // td, num_layers, n_src // ts)

    flops = (2 * num_layers * n_dst * n_src * c_in          # adj @ x
             + 2 * num_layers * n_dst * 3 * c_in * h2)      # fused linear
    bytes_accessed = (adj_stack.size * adj_stack.dtype.itemsize
                      + num_layers * (n_src + n_dst) * c_in * 4
                      + w_stack.size * 4 + b_stack.size * 4
                      + n_dst * num_layers * h2 * 4)

    return pl.pallas_call(
        _fused_sage_layers_kernel,
        grid=grid,
        in_specs=[
            pl.BlockSpec((1, td, ts), lambda d, l, s: (l, d, s)),        # adj (bf16)
            pl.BlockSpec((ts, c_in), lambda d, l, s: (s, 0)),            # x as source
            pl.BlockSpec((td, c_in), lambda d, l, s: (d, 0)),            # x as target
            pl.BlockSpec((1, 3 * c_in, h2), lambda d, l, s: (l, 0, 0)),  # packed weights
            pl.BlockSpec((1, 1, h2), lambda d, l, s: (l, 0, 0)),         # packed bias
        ],
        # each (dst tile, layer) writes its lane-dense block straight into the
        # (Nd, L*2H) concat buffer -> no JAX-side jnp.concatenate
        out_specs=pl.BlockSpec((td, h2), lambda d, l, s: (d, l)),
        out_shape=jax.ShapeDtypeStruct((n_dst, num_layers * h2), jnp.float32),
        scratch_shapes=[
            pltpu.VMEM((td, c_in), jnp.float32),   # running neighbor sum
            pltpu.VMEM((td, c_in), jnp.float32),   # running neighbor max
            pltpu.VMEM((td, 1), jnp.float32),      # running degree
        ],
        compiler_params=pltpu.CompilerParams(
            dimension_semantics=("parallel", "arbitrary", "arbitrary"),
            vmem_limit_bytes=32 * 1024 * 1024),
        cost_estimate=pl.CostEstimate(flops=int(flops),
                                      transcendentals=int(n_dst * num_layers),
                                      bytes_accessed=int(bytes_accessed)),
    )(adj_stack, x, x, w_stack, b_stack)


def post_mp_log_softmax(h, w_post_pad, b_post_pad):
    n_dst, feat = h.shape
    c_pad = w_post_pad.shape[1]
    td = _pick_tile(n_dst, 256, 8)
    return pl.pallas_call(
        _post_mp_kernel,
        grid=(n_dst // td,),
        in_specs=[
            pl.BlockSpec((td, feat), lambda d: (d, 0)),
            pl.BlockSpec((feat, c_pad), lambda d: (0, 0)),
            pl.BlockSpec((1, c_pad), lambda d: (0, 0)),
        ],
        out_specs=pl.BlockSpec((td, c_pad), lambda d: (d, 0)),
        out_shape=jax.ShapeDtypeStruct((n_dst, c_pad), jnp.float32),
        compiler_params=pltpu.CompilerParams(
            dimension_semantics=("parallel",),
            vmem_limit_bytes=32 * 1024 * 1024),
        cost_estimate=pl.CostEstimate(
            flops=int(2 * n_dst * feat * c_pad + 4 * n_dst * c_pad),
            transcendentals=int(2 * n_dst * c_pad),
            bytes_accessed=int(4 * (n_dst * feat + feat * c_pad + c_pad + n_dst * c_pad))),
    )(h, w_post_pad, b_post_pad)


# ----------------------------------------------------------------------------
# Parameters: init + packing
# ----------------------------------------------------------------------------
def init_params(key, in_channels, hidden_channels, out_channels, num_layers):
    """PyTorch-Linear-style uniform init; weights stored (in, out) so kernels do x @ W."""
    params = {"layers": []}

    def linear(key, fan_in, fan_out, bias):
        kw, kb = jax.random.split(key)
        bound = 1.0 / jnp.sqrt(jnp.float32(fan_in))
        w = jax.random.uniform(kw, (fan_in, fan_out), jnp.float32, -bound, bound)
        b = (jax.random.uniform(kb, (1, fan_out), jnp.float32, -bound, bound)
             if bias else jnp.zeros((1, fan_out), jnp.float32))
        return w, b

    for i in range(num_layers):
        cin = in_channels if i == 0 else hidden_channels
        key, k1, k2, k3, k4 = jax.random.split(key, 5)
        wl_mean, bl_mean = linear(k1, cin, hidden_channels, bias=True)   # lin_l (mean)
        wr_mean, _ = linear(k2, cin, hidden_channels, bias=False)        # lin_r (mean)
        wl_max, bl_max = linear(k3, cin, hidden_channels, bias=True)     # lin_l (max)
        wr_max, _ = linear(k4, cin, hidden_channels, bias=False)         # lin_r (max)
        params["layers"].append(dict(wl_mean=wl_mean, bl_mean=bl_mean, wr_mean=wr_mean,
                                     wl_max=wl_max, bl_max=bl_max, wr_max=wr_max))

    key, kp = jax.random.split(key)
    w_post, b_post = linear(kp, num_layers * 2 * hidden_channels, out_channels, bias=True)
    params["w_post"] = w_post
    params["b_post"] = b_post
    return params


def pack_params(params):
    """Pack the four per-layer SAGEConv linears into one (3C, 2H) matrix per layer
    (row blocks act on [agg_mean | agg_max | x_dst]); pad post_mp to 128 output lanes."""
    c_in, hidden = params["layers"][0]["wl_mean"].shape
    zeros = jnp.zeros((c_in, hidden), jnp.float32)
    w_stack, b_stack = [], []
    for p in params["layers"]:
        w_full = jnp.concatenate([
            jnp.concatenate([p["wl_mean"], zeros], axis=1),          # * agg_mean
            jnp.concatenate([zeros, p["wl_max"]], axis=1),           # * agg_max
            jnp.concatenate([p["wr_mean"], p["wr_max"]], axis=1),    # * x_dst
        ], axis=0)                                                   # (3C, 2H)
        w_stack.append(w_full)
        b_stack.append(jnp.concatenate([p["bl_mean"], p["bl_max"]], axis=1))
    w_stack = jnp.stack(w_stack, axis=0)                 # (L, 3C, 2H)
    b_stack = jnp.stack(b_stack, axis=0)                 # (L, 1, 2H)

    w_post, b_post = params["w_post"], params["b_post"]
    feat, c_out = w_post.shape
    c_pad = ((c_out + 127) // 128) * 128
    w_post_pad = jnp.zeros((feat, c_pad), jnp.float32).at[:, :c_out].set(w_post)
    # padded logits get a huge negative bias so they vanish under the softmax
    b_post_pad = jnp.full((1, c_pad), -1e30, jnp.float32).at[:, :c_out].set(b_post)
    return dict(w_stack=w_stack, b_stack=b_stack,
                w_post_pad=w_post_pad, b_post_pad=b_post_pad)


# ----------------------------------------------------------------------------
# Forward (Pallas) + pure-JAX reference
# ----------------------------------------------------------------------------
@jax.jit
def graphsage_pp_damc_forward(packed, x, adj_stack):
    """Returns log-softmax outputs padded to 128 classes (slice to out_channels)."""
    h = fused_sage_layers(adj_stack, x, packed["w_stack"], packed["b_stack"])
    return post_mp_log_softmax(h, packed["w_post_pad"], packed["b_post_pad"])


def forward_reference(params, x, adjs):
    """Pure-JAX reference with the module's semantics (validation only)."""
    num_layers = len(params["layers"])
    outs = []
    xs = x
    for i, adj in enumerate(adjs):
        n_dst = adj.shape[0]
        x_dst = xs[:n_dst]
        deg = jnp.sum(adj, axis=1, keepdims=True)
        agg_mean = (adj @ xs) / jnp.maximum(deg, 1.0)
        masked = jnp.where(adj[:, :, None] > 0, xs[None, :, :], -jnp.inf)
        agg_max = jnp.where(deg > 0, jnp.max(masked, axis=1), 0.0)
        p = params["layers"][i]
        outs.append(agg_mean @ p["wl_mean"] + p["bl_mean"] + x_dst @ p["wr_mean"])
        outs.append(agg_max @ p["wl_max"] + p["bl_max"] + x_dst @ p["wr_max"])
        if i != num_layers - 1:
            xs = jnp.maximum(xs, 0.0)
    h = jnp.concatenate(outs, axis=1)
    logits = h @ params["w_post"] + params["b_post"]
    return jax.nn.log_softmax(logits, axis=-1)


# ----------------------------------------------------------------------------
if __name__ == "__main__":
    num_layers = 2
    in_channels = 64
    hidden_channels = 64     # reference module requires in_channels == hidden_channels
    out_channels = 8
    num_nodes = 16

    key = jax.random.PRNGKey(0)
    k_params, k_x, k_a0, k_a1 = jax.random.split(key, 4)

    params = init_params(k_params, in_channels, hidden_channels, out_channels, num_layers)
    packed = pack_params(params)
    x = jax.random.normal(k_x, (num_nodes, in_channels), jnp.float32)

    # Dense 0/1 adjacency masks, one per sampled hop; self-loops keep deg >= 1.
    def make_adj(k):
        a = (jax.random.uniform(k, (num_nodes, num_nodes)) < 0.3).astype(jnp.float32)
        return jnp.maximum(a, jnp.eye(num_nodes, dtype=jnp.float32))

    adjs = [make_adj(k_a0), make_adj(k_a1)]
    # bf16 adjacency (0/1 exact): halves the dominant HBM traffic / VMEM tile bytes.
    adj_stack = jnp.stack(adjs, axis=0).astype(jnp.bfloat16)

    out_pad = jax.block_until_ready(graphsage_pp_damc_forward(packed, x, adj_stack))
    out = out_pad[:, :out_channels]

    assert out.shape == (num_nodes, out_channels)
    # log-softmax rows must (exp-)sum to ~1
    assert jnp.allclose(jnp.sum(jnp.exp(out), axis=-1), 1.0, atol=1e-4)

    # numerical check against a pure-JAX reference of the same module
    ref = forward_reference(params, x, adjs)
    max_err = float(jnp.max(jnp.abs(out - ref)))
    assert max_err < 0.1, f"kernel/reference mismatch: max |err| = {max_err}"
    print("KERNEL_OK")
</pallas_src>

<mosaic_0001>
module attributes {stable_mosaic.version = 11 : i64} {
  func.func @_post_mp_kernel(%arg0: i32, %arg1: memref<16x256xf32, #tpu.memory_space<vmem>>, %arg2: memref<256x128xf32, #tpu.memory_space<vmem>>, %arg3: memref<1x128xf32, #tpu.memory_space<vmem>>, %arg4: memref<16x128xf32, #tpu.memory_space<vmem>>) attributes {dimension_semantics = [#tpu.dimension_semantics<parallel>], iteration_bounds = array<i64: 1>, scalar_prefetch = 0 : i64, scratch_operands = 0 : i64, tpu.core_type = #tpu.core_type<tc>, window_params = [{transform_indices = @transform_0, window_bounds = array<i64: 16, 256>}, {pipeline_mode = #tpu.pipeline_mode<synchronous>, transform_indices = @transform_1, window_bounds = array<i64: 256, 128>}, {pipeline_mode = #tpu.pipeline_mode<synchronous>, transform_indices = @transform_2, window_bounds = array<i64: 1, 128>}, {transform_indices = @transform_3, window_bounds = array<i64: 16, 128>}]} {
    %c0 = arith.constant 0 : index
    %c0_0 = arith.constant 0 : index
    %0 = vector.load %arg1[%c0, %c0_0] : memref<16x256xf32, #tpu.memory_space<vmem>>, vector<16x256xf32>
    %c0_1 = arith.constant 0 : index
    %c0_2 = arith.constant 0 : index
    %1 = vector.load %arg2[%c0_1, %c0_2] : memref<256x128xf32, #tpu.memory_space<vmem>>, vector<256x128xf32>
    %cst = arith.constant dense<0.000000e+00> : vector<16x128xf32>
    %2 = tpu.matmul %0, %1, %cst {dimension_numbers = #tpu.dot_dimension_numbers<[1], [0], [0], [1], [0, 0, 1, 1], [], []>} : vector<16x256xf32>, vector<256x128xf32>, vector<16x128xf32> -> vector<16x128xf32>
    %c0_3 = arith.constant 0 : index
    %c0_4 = arith.constant 0 : index
    %3 = vector.load %arg3[%c0_3, %c0_4] : memref<1x128xf32, #tpu.memory_space<vmem>>, vector<1x128xf32>
    %4 = vector.broadcast %3 : vector<1x128xf32> to vector<16x128xf32>
    %5 = arith.addf %2, %4 : vector<16x128xf32>
    %cst_5 = arith.constant dense<0xFF800000> : vector<16xf32>
    %6 = vector.multi_reduction <maximumf>, %5, %cst_5 [1] : vector<16x128xf32> to vector<16xf32>
    %7 = vector.shape_cast %6 : vector<16xf32> to vector<16x1xf32>
    %8 = vector.broadcast %7 : vector<16x1xf32> to vector<16x128xf32>
    %9 = arith.subf %5, %8 : vector<16x128xf32>
    %10 = math.exp %9 : vector<16x128xf32>
    %cst_6 = arith.constant dense<0.000000e+00> : vector<16xf32>
    %11 = vector.multi_reduction <add>, %10, %cst_6 [1] : vector<16x128xf32> to vector<16xf32>
    %12 = vector.shape_cast %11 : vector<16xf32> to vector<16x1xf32>
    %13 = math.log %12 : vector<16x1xf32>
    %14 = arith.addf %7, %13 : vector<16x1xf32>
    %15 = vector.broadcast %14 : vector<16x1xf32> to vector<16x128xf32>
    %16 = arith.subf %5, %15 : vector<16x128xf32>
    %c0_7 = arith.constant 0 : index
    %c0_8 = arith.constant 0 : index
    %17 = vector.load %arg4[%c0_7, %c0_8] : memref<16x128xf32, #tpu.memory_space<vmem>>, vector<16x128xf32>
    tpu.vector_store %arg4[%c0_7, %c0_8], %16 {strides = array<i32>} : memref<16x128xf32, #tpu.memory_space<vmem>>, vector<16x128xf32>,
    return
  }
  func.func @transform_0(%arg0: i32) -> (i32, i32) {
    %c0_i32 = arith.constant 0 : i32
    %c0_i32_0 = arith.constant 0 : i32
    return %arg0, %c0_i32 : i32, i32
  }
  func.func @transform_1(%arg0: i32) -> (i32, i32) {
    %c0_i32 = arith.constant 0 : i32
    %c0_i32_0 = arith.constant 0 : i32
    %c0_i32_1 = arith.constant 0 : i32
    return %c0_i32, %c0_i32_0 : i32, i32
  }
  func.func @transform_2(%arg0: i32) -> (i32, i32) {
    %c0_i32 = arith.constant 0 : i32
    %c0_i32_0 = arith.constant 0 : i32
    %c0_i32_1 = arith.constant 0 : i32
    return %c0_i32, %c0_i32_0 : i32, i32
  }
  func.func @transform_3(%arg0: i32) -> (i32, i32) {
    %c0_i32 = arith.constant 0 : i32
    %c0_i32_0 = arith.constant 0 : i32
    return %arg0, %c0_i32 : i32, i32
  }
}

module attributes {stable_mosaic.version = 11 : i64} {
  func.func @_fused_sage_layers_kernel(%arg0: i32, %arg1: i32, %arg2: i32, %arg3: memref<1x16x16xbf16, #tpu.memory_space<vmem>>, %arg4: memref<16x64xf32, #tpu.memory_space<vmem>>, %arg5: memref<16x64xf32, #tpu.memory_space<vmem>>, %arg6: memref<1x192x128xf32, #tpu.memory_space<vmem>>, %arg7: memref<1x1x128xf32, #tpu.memory_space<vmem>>, %arg8: memref<16x128xf32, #tpu.memory_space<vmem>>, %arg9: memref<16x64xf32, #tpu.memory_space<vmem>>, %arg10: memref<16x64xf32, #tpu.memory_space<vmem>>, %arg11: memref<16x1xf32, #tpu.memory_space<vmem>>) attributes {dimension_semantics = [#tpu.dimension_semantics<parallel>, #tpu.dimension_semantics<arbitrary>, #tpu.dimension_semantics<arbitrary>], iteration_bounds = array<i64: 1, 2, 1>, scalar_prefetch = 0 : i64, scratch_operands = 3 : i64, tpu.core_type = #tpu.core_type<tc>, window_params = [{transform_indices = @transform_0, window_bounds = array<i64: 1, 16, 16>}, {transform_indices = @transform_1, window_bounds = array<i64: 16, 64>}, {transform_indices = @transform_2, window_bounds = array<i64: 16, 64>}, {transform_indices = @transform_3, window_bounds = array<i64: 1, 192, 128>}, {transform_indices = @transform_4, window_bounds = array<i64: 1, 1, 128>}, {transform_indices = @transform_5, window_bounds = array<i64: 16, 128>}]} {
    %c0_i32 = arith.constant 0 : i32
    %0 = arith.cmpi eq, %arg2, %c0_i32 : i32
    %1 = arith.extui %0 : i1 to i32
    %c0_i32_0 = arith.constant 0 : i32
    %2 = arith.cmpi ne, %1, %c0_i32_0 : i32
    scf.if %2 {
      %cst_26 = arith.constant 0.000000e+00 : f32
      %37 = vector.broadcast %cst_26 : f32 to vector<16x64xf32>
      %c0_27 = arith.constant 0 : index
      %c0_28 = arith.constant 0 : index
      %38 = vector.load %arg9[%c0_27, %c0_28] : memref<16x64xf32, #tpu.memory_space<vmem>>, vector<16x64xf32>
      tpu.vector_store %arg9[%c0_27, %c0_28], %37 {strides = array<i32>} : memref<16x64xf32, #tpu.memory_space<vmem>>, vector<16x64xf32>,
      %cst_29 = arith.constant 0xFF800000 : f32
      %39 = vector.broadcast %cst_29 : f32 to vector<16x64xf32>
      %c0_30 = arith.constant 0 : index
      %c0_31 = arith.constant 0 : index
      %40 = vector.load %arg10[%c0_30, %c0_31] : memref<16x64xf32, #tpu.memory_space<vmem>>, vector<16x64xf32>
      tpu.vector_store %arg10[%c0_30, %c0_31], %39 {strides = array<i32>} : memref<16x64xf32, #tpu.memory_space<vmem>>, vector<16x64xf32>,
      %cst_32 = arith.constant 0.000000e+00 : f32
      %41 = vector.broadcast %cst_32 : f32 to vector<16x1xf32>
      %c0_33 = arith.constant 0 : index
      %c0_34 = arith.constant 0 : index
      %42 = vector.load %arg11[%c0_33, %c0_34] : memref<16x1xf32, #tpu.memory_space<vmem>>, vector<16x1xf32>
      tpu.vector_store %arg11[%c0_33, %c0_34], %41 {strides = array<i32>} : memref<16x1xf32, #tpu.memory_space<vmem>>, vector<16x1xf32>,
    } else {
    }
    %c0_i32_1 = arith.constant 0 : i32
    %3 = arith.cmpi sgt, %arg1, %c0_i32_1 : i32
    %cst = arith.constant 0.000000e+00 : f32
    %cst_2 = arith.constant 0xFF800000 : f32
    %4 = arith.select %3, %cst, %cst_2 : f32
    %c0 = arith.constant 0 : index
    %c0_3 = arith.constant 0 : index
    %c0_4 = arith.constant 0 : index
    %5 = vector.load %arg3[%c0, %c0_3, %c0_4] : memref<1x16x16xbf16, #tpu.memory_space<vmem>>, vector<1x16x16xbf16>
    %6 = vector.shape_cast %5 : vector<1x16x16xbf16> to vector<16x16xbf16>
    %7 = arith.extf %6 : vector<16x16xbf16> to vector<16x16xf32>
    %c0_5 = arith.constant 0 : index
    %c0_6 = arith.constant 0 : index
    %8 = vector.load %arg4[%c0_5, %c0_6] : memref<16x64xf32, #tpu.memory_space<vmem>>, vector<16x64xf32>
    %9 = vector.broadcast %4 : f32 to vector<16x64xf32>
    %10 = arith.maximumf %8, %9 : vector<16x64xf32>
    %c0_7 = arith.constant 0 : index
    %c0_8 = arith.constant 0 : index
    %11 = vector.load %arg9[%c0_7, %c0_8] : memref<16x64xf32, #tpu.memory_space<vmem>>, vector<16x64xf32>
    %cst_9 = arith.constant dense<0.000000e+00> : vector<16x64xf32>
    %12 = tpu.matmul %7, %10, %cst_9 {dimension_numbers = #tpu.dot_dimension_numbers<[1], [0], [0], [1], [0, 0, 1, 1], [], []>} : vector<16x16xf32>, vector<16x64xf32>, vector<16x64xf32> -> vector<16x64xf32>
    %13 = arith.addf %11, %12 : vector<16x64xf32>
    %c0_10 = arith.constant 0 : index
    %c0_11 = arith.constant 0 : index
    %14 = vector.load %arg9[%c0_10, %c0_11] : memref<16x64xf32, #tpu.memory_space<vmem>>, vector<16x64xf32>
    tpu.vector_store %arg9[%c0_10, %c0_11], %13 {strides = array<i32>} : memref<16x64xf32, #tpu.memory_space<vmem>>, vector<16x64xf32>,
    %c0_12 = arith.constant 0 : index
    %c0_13 = arith.constant 0 : index
    %15 = vector.load %arg11[%c0_12, %c0_13] : memref<16x1xf32, #tpu.memory_space<vmem>>, vector<16x1xf32>
    %cst_14 = arith.constant dense<0.000000e+00> : vector<16xf32>
    %16 = vector.multi_reduction <add>, %7, %cst_14 [1] : vector<16x16xf32> to vector<16xf32>
    %17 = vector.shape_cast %16 : vector<16xf32> to vector<16x1xf32>
    %18 = arith.addf %15, %17 : vector<16x1xf32>
    %c0_15 = arith.constant 0 : index
    %c0_16 = arith.constant 0 : index
    %19 = vector.load %arg11[%c0_15, %c0_16] : memref<16x1xf32, #tpu.memory_space<vmem>>, vector<16x1xf32>
    tpu.vector_store %arg11[%c0_15, %c0_16], %18 {strides = array<i32>} : memref<16x1xf32, #tpu.memory_space<vmem>>, vector<16x1xf32>,
    %20 = vector.shape_cast %7 : vector<16x16xf32> to vector<16x16x1xf32>
    %cst_17 = arith.constant 0.000000e+00 : f32
    %21 = vector.broadcast %cst_17 : f32 to vector<16x16x1xf32>
    %22 = arith.cmpf ogt, %20, %21 : vector<16x16x1xf32>
    %23 = vector.shape_cast %10 : vector<16x64xf32> to vector<1x16x64xf32>
    %cst_18 = arith.constant 0xFF800000 : f32
    %24 = vector.shape_cast %22 : vector<16x16x1xi1> to vector<16x16x1xi1>
    %25 = vector.broadcast %24 : vector<16x16x1xi1> to vector<16x16x64xi1>
    %26 = vector.shape_cast %23 : vector<1x16x64xf32> to vector<1x16x64xf32>
    %27 = vector.broadcast %26 : vector<1x16x64xf32> to vector<16x16x64xf32>
    %28 = vector.broadcast %cst_18 : f32 to vector<16x16x64xf32>
    %29 = arith.select %25, %27, %28 : vector<16x16x64xi1>, vector<16x16x64xf32>
    %c0_19 = arith.constant 0 : index
    %c0_20 = arith.constant 0 : index
    %30 = vector.load %arg10[%c0_19, %c0_20] : memref<16x64xf32, #tpu.memory_space<vmem>>, vector<16x64xf32>
    %cst_21 = arith.constant dense<0xFF800000> : vector<16x64xf32>
    %31 = vector.multi_reduction <maximumf>, %29, %cst_21 [1] : vector<16x16x64xf32> to vector<16x64xf32>
    %32 = arith.maximumf %30, %31 : vector<16x64xf32>
    %c0_22 = arith.constant 0 : index
    %c0_23 = arith.constant 0 : index
    %33 = vector.load %arg10[%c0_22, %c0_23] : memref<16x64xf32, #tpu.memory_space<vmem>>, vector<16x64xf32>
    tpu.vector_store %arg10[%c0_22, %c0_23], %32 {strides = array<i32>} : memref<16x64xf32, #tpu.memory_space<vmem>>, vector<16x64xf32>,
    %c0_i32_24 = arith.constant 0 : i32
    %34 = arith.cmpi eq, %arg2, %c0_i32_24 : i32
    %35 = arith.extui %34 : i1 to i32
    %c0_i32_25 = arith.constant 0 : i32
    %36 = arith.cmpi ne, %35, %c0_i32_25 : i32
    scf.if %36 {
      %c0_26 = arith.constant 0 : index
      %c0_27 = arith.constant 0 : index
      %37 = vector.load %arg11[%c0_26, %c0_27] : memref<16x1xf32, #tpu.memory_space<vmem>>, vector<16x1xf32>
      %cst_28 = arith.constant 1.000000e+00 : f32
      %38 = vector.broadcast %cst_28 : f32 to vector<16x1xf32>
      %39 = arith.maximumf %37, %38 : vector<16x1xf32>
      %40 = tpu.reciprocal %39 {approx = true} : vector<16x1xf32> -> vector<16x1xf32>
      %c0_29 = arith.constant 0 : index
      %c0_30 = arith.constant 0 : index
      %41 = vector.load %arg9[%c0_29, %c0_30] : memref<16x64xf32, #tpu.memory_space<vmem>>, vector<16x64xf32>
      %42 = vector.broadcast %40 : vector<16x1xf32> to vector<16x64xf32>
      %43 = arith.mulf %41, %42 : vector<16x64xf32>
      %cst_31 = arith.constant 0.000000e+00 : f32
      %44 = vector.broadcast %cst_31 : f32 to vector<16x1xf32>
      %45 = arith.cmpf ogt, %37, %44 : vector<16x1xf32>
      %c0_32 = arith.constant 0 : index
      %c0_33 = arith.constant 0 : index
      %46 = vector.load %arg10[%c0_32, %c0_33] : memref<16x64xf32, #tpu.memory_space<vmem>>, vector<16x64xf32>
      %cst_34 = arith.constant 0.000000e+00 : f32
      %47 = vector.shape_cast %45 : vector<16x1xi1> to vector<16x1xi1>
      %48 = vector.broadcast %47 : vector<16x1xi1> to vector<16x64xi1>
      %49 = vector.broadcast %cst_34 : f32 to vector<16x64xf32>
      %50 = arith.select %48, %46, %49 : vector<16x64xi1>, vector<16x64xf32>
      %c0_35 = arith.constant 0 : index
      %c0_36 = arith.constant 0 : index
      %51 = vector.load %arg5[%c0_35, %c0_36] : memref<16x64xf32, #tpu.memory_space<vmem>>, vector<16x64xf32>
      %52 = vector.broadcast %4 : f32 to vector<16x64xf32>
      %53 = arith.maximumf %51, %52 : vector<16x64xf32>
      %54 = tpu.concatenate %43, %50, %53 in 1 : vector<16x64xf32>, vector<16x64xf32>, vector<16x64xf32> -> vector<16x192xf32>
      %c0_37 = arith.constant 0 : index
      %c0_38 = arith.constant 0 : index
      %c0_39 = arith.constant 0 : index
      %55 = vector.load %arg6[%c0_37, %c0_38, %c0_39] : memref<1x192x128xf32, #tpu.memory_space<vmem>>, vector<1x192x128xf32>
      %56 = vector.shape_cast %55 : vector<1x192x128xf32> to vector<192x128xf32>
      %cst_40 = arith.constant dense<0.000000e+00> : vector<16x128xf32>
      %57 = tpu.matmul %54, %56, %cst_40 {dimension_numbers = #tpu.dot_dimension_numbers<[1], [0], [0], [1], [0, 0, 1, 1], [], []>} : vector<16x192xf32>, vector<192x128xf32>, vector<16x128xf32> -> vector<16x128xf32>
      %c0_41 = arith.constant 0 : index
      %c0_42 = arith.constant 0 : index
      %c0_43 = arith.constant 0 : index
      %58 = vector.load %arg7[%c0_41, %c0_42, %c0_43] : memref<1x1x128xf32, #tpu.memory_space<vmem>>, vector<1x1x128xf32>
      %59 = vector.shape_cast %58 : vector<1x1x128xf32> to vector<1x128xf32>
      %60 = vector.broadcast %59 : vector<1x128xf32> to vector<16x128xf32>
      %61 = arith.addf %57, %60 : vector<16x128xf32>
      %c0_44 = arith.constant 0 : index
      %c0_45 = arith.constant 0 : index
      %62 = vector.load %arg8[%c0_44, %c0_45] : memref<16x128xf32, #tpu.memory_space<vmem>>, vector<16x128xf32>
      tpu.vector_store %arg8[%c0_44, %c0_45], %61 {strides = array<i32>} : memref<16x128xf32, #tpu.memory_space<vmem>>, vector<16x128xf32>,
    } else {
    }
    return
  }
  func.func @transform_0(%arg0: i32, %arg1: i32, %arg2: i32) -> (i32, i32, i32) {
    %c0_i32 = arith.constant 0 : i32
    return %arg1, %arg0, %arg2 : i32, i32, i32
  }
  func.func @transform_1(%arg0: i32, %arg1: i32, %arg2: i32) -> (i32, i32) {
    %c0_i32 = arith.constant 0 : i32
    %c0_i32_0 = arith.constant 0 : i32
    return %arg2, %c0_i32 : i32, i32
  }
  func.func @transform_2(%arg0: i32, %arg1: i32, %arg2: i32) -> (i32, i32) {
    %c0_i32 = arith.constant 0 : i32
    %c0_i32_0 = arith.constant 0 : i32
    return %arg0, %c0_i32 : i32, i32
  }
  func.func @transform_3(%arg0: i32, %arg1: i32, %arg2: i32) -> (i32, i32, i32) {
    %c0_i32 = arith.constant 0 : i32
    %c0_i32_0 = arith.constant 0 : i32
    %c0_i32_1 = arith.constant 0 : i32
    return %arg1, %c0_i32, %c0_i32_0 : i32, i32, i32
  }
  func.func @transform_4(%arg0: i32, %arg1: i32, %arg2: i32) -> (i32, i32, i32) {
    %c0_i32 = arith.constant 0 : i32
    %c0_i32_0 = arith.constant 0 : i32
    %c0_i32_1 = arith.constant 0 : i32
    return %arg1, %c0_i32, %c0_i32_0 : i32, i32, i32
  }
  func.func @transform_5(%arg0: i32, %arg1: i32, %arg2: i32) -> (i32, i32) {
    %c0_i32 = arith.constant 0 : i32
    return %arg0, %arg1 : i32, i32
  }
}

</mosaic_0001>

<bundles_post_ra>
// kernel: graphsage_pp_damc_forward.3
= control target key start
LH: loop header
LB: loop body
LE: loop exit
PB: predicated region body
PF: predicated region fallthrough
CT: control target
= control target key end

     0   :  { %s414_s0 = inlined_call_operand.vmem [shape: f32[16,256], index: 0, kind: input, shape index: {}]   ;;  %s415_s1 = inlined_call_operand.vmem [shape: f32[256,128], index: 1, kind: input, shape index: {}]   ;;  %s416_s2 = inlined_call_operand.vmem [shape: f32[1,128], index: 2, kind: input, shape index: {}]   ;;  %s417_s3 = inlined_call_operand.hbm [shape: f32[16,128], index: 3, kind: output, shape index: {}]  }
   0x1   :  { %v50_v0 = vld [vmem:[%s415_s1 + $0xf8] sm:$0xff]  ;;  %v49_v2 = vld [vmem:[%s415_s1 + $0xf0] sm:$0xff]  ;;  %v48_v4 = vld [vmem:[%s415_s1 + $0xe8] sm:$0xff] }
   0x2   :  { %v34_v1 = vld [vmem:[%s415_s1 + $0x78] sm:$0xff]  ;;  %174 = vmatprep.subr.mxu0 %v50_v0  ;;  %212 = vmatprep.subr.mxu1 %v50_v0  ;;  %v33_v3 = vld [vmem:[%s415_s1 + $0x70] sm:$0xff]  ;;  %v32_v5 = vld [vmem:[%s415_s1 + $0x68] sm:$0xff] }
   0x3   :  { %175 = vmatpush3.msra.mxu0 %v34_v1  ;;  %228 = vmatpush3.msra.mxu1 %v34_v1  ;;  %v47_v6 = vld [vmem:[%s415_s1 + $0xe0] sm:$0xff]  ;;  %v46_v8 = vld [vmem:[%s415_s1 + $0xd8] sm:$0xff]  ;;  %v45_v10 = vld [vmem:[%s415_s1 + $0xd0] sm:$0xff] }
   0x4   :  { %176 = vmatprep.subr.mxu0 %v49_v2  ;;  %213 = vmatprep.subr.mxu1 %v49_v2  ;;  %v31_v7 = vld [vmem:[%s415_s1 + $0x60] sm:$0xff]  ;;  %v30_v9 = vld [vmem:[%s415_s1 + $0x58] sm:$0xff]  ;;  %v29_v11 = vld [vmem:[%s415_s1 + $0x50] sm:$0xff] }
   0x5   :  { %177 = vmatpush3.msra.mxu0 %v33_v3  ;;  %229 = vmatpush3.msra.mxu1 %v33_v3  ;;  %v44_v12 = vld [vmem:[%s415_s1 + $0xc8] sm:$0xff]  ;;  %v43_v14 = vld [vmem:[%s415_s1 + $0xc0] sm:$0xff] }
   0x6   :  { %178 = vmatprep.subr.mxu0 %v48_v4  ;;  %214 = vmatprep.subr.mxu1 %v48_v4  ;;  %v28_v13 = vld [vmem:[%s415_s1 + $0x48] sm:$0xff] }
   0x7   :  { %179 = vmatpush3.msra.mxu0 %v32_v5  ;;  %230 = vmatpush3.msra.mxu1 %v32_v5 }
   0x8   :  { %180 = vmatprep.subr.mxu0 %v47_v6  ;;  %215 = vmatprep.subr.mxu1 %v47_v6 }
   0x9   :  { %181 = vmatpush3.msra.mxu0 %v31_v7  ;;  %231 = vmatpush3.msra.mxu1 %v31_v7 }
   0xa   :  { %182 = vmatprep.subr.mxu0 %v46_v8  ;;  %216 = vmatprep.subr.mxu1 %v46_v8 }
   0xb   :  { %183 = vmatpush3.msra.mxu0 %v30_v9  ;;  %232 = vmatpush3.msra.mxu1 %v30_v9 }
   0xc   :  { %184 = vmatprep.subr.mxu0 %v45_v10  ;;  %217 = vmatprep.subr.mxu1 %v45_v10 }
   0xd   :  { %185 = vmatpush3.msra.mxu0 %v29_v11  ;;  %233 = vmatpush3.msra.mxu1 %v29_v11 }
   0xe   :  { %8 = vsyncpa [#allocation3], 0  ;;  %186 = vmatprep.subr.mxu0 %v44_v12  ;;  %218 = vmatprep.subr.mxu1 %v44_v12  ;;  %v27_v15 = vld [vmem:[%s415_s1 + $0x40] sm:$0xff]  ;;  %v42_v16 = vld [vmem:[%s415_s1 + $0xb8] sm:$0xff] }
   0xf   :  { %187 = vmatpush3.msra.mxu0 %v28_v13  ;;  %234 = vmatpush3.msra.mxu1 %v28_v13  ;;  %v26_v17 = vld [vmem:[%s415_s1 + $0x38] sm:$0xff]  ;;  %v41_v18 = vld [vmem:[%s415_s1 + $0xb0] sm:$0xff]  ;;  %v40_v20 = vld [vmem:[%s415_s1 + $0xa8] sm:$0xff] }
  0x10   :  { %188 = vmatprep.subr.mxu0 %v43_v14  ;;  %219 = vmatprep.subr.mxu1 %v43_v14  ;;  %v25_v19 = vld [vmem:[%s415_s1 + $0x30] sm:$0xff]  ;;  %v24_v21 = vld [vmem:[%s415_s1 + $0x28] sm:$0xff]  ;;  %v39_v22 = vld [vmem:[%s415_s1 + $0xa0] sm:$0xff] }
  0x11   :  { %189 = vmatpush3.msra.mxu0 %v27_v15  ;;  %235 = vmatpush3.msra.mxu1 %v27_v15  ;;  %v23_v23 = vld [vmem:[%s415_s1 + $0x20] sm:$0xff]  ;;  %v38_v24 = vld [vmem:[%s415_s1 + $0x98] sm:$0xff]  ;;  %v37_v26 = vld [vmem:[%s415_s1 + $0x90] sm:$0xff] }
  0x12   :  { %190 = vmatprep.subr.mxu0 %v42_v16  ;;  %220 = vmatprep.subr.mxu1 %v42_v16  ;;  %v22_v25 = vld [vmem:[%s415_s1 + $0x18] sm:$0xff]  ;;  %v21_v27 = vld [vmem:[%s415_s1 + $0x10] sm:$0xff]  ;;  %v36_v28 = vld [vmem:[%s415_s1 + $0x88] sm:$0xff] }
  0x13   :  { %191 = vmatpush3.msra.mxu0 %v26_v17  ;;  %236 = vmatpush3.msra.mxu1 %v26_v17  ;;  %v20_v29 = vld [vmem:[%s415_s1 + $0x8] sm:$0xff]  ;;  %v35_v30 = vld [vmem:[%s415_s1 + $0x80] sm:$0xff]  ;;  %v18_v34 = vld [vmem:[%s414_s0 + $0x18] sm:$0xff] }
  0x14   :  { %192 = vmatprep.subr.mxu0 %v41_v18  ;;  %221 = vmatprep.subr.mxu1 %v41_v18  ;;  %v16_v31 = vld [vmem:[%s414_s0 + $0x8] sm:$0xff]  ;;  %v19_v32 = vld [vmem:[%s415_s1] sm:$0xff]  ;;  %v17_v35 = vld [vmem:[%s414_s0 + $0x10] sm:$0xff] }
  0x15   :  { %193 = vmatpush3.msra.mxu0 %v25_v19  ;;  %237 = vmatpush3.msra.mxu1 %v25_v19  ;;  %v15_v33 = vld [vmem:[%s414_s0] sm:$0xff]  ;;  %s277_s0 = smov [#allocation2]  }
  0x16   :  { %194 = vmatprep.subr.mxu0 %v40_v20  ;;  %222 = vmatprep.subr.mxu1 %v40_v20  ;;  %v173_v37 = vld [vmem:[%s416_s2] ss:$0 sm:$0xff]  ;;  %s162_s2 = sshll.u32 %s277_s0, 4  ;;  %s163_s2 = int_to_ptr.vmem [resolvable:$true] %s162_s2 }
  0x17   :  { %195 = vmatpush3.msra.mxu0 %v24_v21  ;;  %238 = vmatpush3.msra.mxu1 %v24_v21  ;;  %s255_s4 = scalar_lea.vmem %s163_s2, 256  ;;  %p260_p1 = scmp.lt.s32.totalorder %s163_s2, %s163_s2 }
  0x18   :  { %196 = vmatprep.subr.mxu0 %v39_v22  ;;  %223 = vmatprep.subr.mxu1 %v39_v22  ;;  %p256_p0 = scmp.ne.s32.totalorder %s163_s2, %s255_s4  ;;  %p261_p2 = scmp.lt.s32.totalorder %s255_s4, %s255_s4 }
  0x19   :  { %197 = vmatpush3.msra.mxu0 %v23_v23  ;;  %239 = vmatpush3.msra.mxu1 %v23_v23 }
  0x1a   :  { %198 = vmatprep.subr.mxu0 %v38_v24  ;;  %224 = vmatprep.subr.mxu1 %v38_v24  ;;  %p262_p3 = por %p261_p2, %p260_p1 }
  0x1b   :  { %199 = vmatpush3.msra.mxu0 %v22_v25  ;;  %240 = vmatpush3.msra.mxu1 %v22_v25 }
  0x1c   :  { %200 = vmatprep.subr.mxu0 %v37_v26  ;;  %225 = vmatprep.subr.mxu1 %v37_v26  ;;  %p263_p4 = pnand %p262_p3, %p256_p0 }
  0x1d   :  { %201 = vmatpush3.msra.mxu0 %v21_v27  ;;  %241 = vmatpush3.msra.mxu1 %v21_v27 }
  0x1e   :  { %202 = vmatprep.subr.mxu0 %v36_v28  ;;  %226 = vmatprep.subr.mxu1 %v36_v28 }
  0x1f   :  { %203 = vmatpush3.msra.mxu0 %v20_v29  ;;  %242 = vmatpush3.msra.mxu1 %v20_v29 }
  0x20   :  { %204 = vmatprep.subr.mxu0 %v35_v30  ;;  %122 = vmatprep.mubr.f32.mxu0 %v16_v31 }
  0x21   :  { %205 = vmatpush3.msra.mxu0 %v19_v32  ;;  %227 = vmatprep.subr.mxu1 %v35_v30 }
  0x22   :  { %123 = vmatmul.mubr.f32.vlgmr.msra.gmra.mxu0 %v15_v33  ;;  %243 = vmatpush3.msra.mxu1 %v19_v32 }
  0x23   :  { %127 = vmatprep.mubr.f32.mxu1 %v18_v34 }
  0x24   :  { %128 = vmatmul.mubr.f32.vlgmr.msra.gmra.mxu1 %v17_v35 }
  0xe2   :  { %v206_v36 = vpop.f32.mrf.mxu0 }
  0xe4   :  { %v207_v38 = vpop.f32.mrf.mxu0  ;;  %v209_v39 = vpop.f32.mrf.mxu1 }
  0xe5   :  { %v208_v40 = vadd.f32 %v207_v38, %v206_v36 }
  0xe6   :  { %v210_v41 = vpop.f32.mrf.mxu1 }
  0xe7   :  { %v125_v42 = vadd.f32 %v208_v40, %v173_v37  ;;  %v211_v43 = vadd.f32 %v210_v41, %v209_v39 }
  0xe9   :  { %133 = vmax.xlane.f32.xlu0 %v125_v42  ;;  %v130_v44 = vadd.f32 %v211_v43, %v173_v37 }
  0xed   :  { %135 = vmax.xlane.f32.xlu0 %v130_v44 }
 0x172   :  { %v134_v45 = vpop.xlane.xlu0 %133 }
 0x173   :  { %v137_v46 = vsub.f32 %v125_v42, %v134_v45 }
 0x175   :  { %v139_v47 = vmul.f32 1.442695, %v137_v46 }
 0x176   :  { %v136_v48 = vpop.xlane.xlu0 %135 }
 0x177   :  { %247 = vpow2.f32 %v139_v47  ;;  %v138_v49 = vsub.f32 %v130_v44, %v136_v48 }
 0x179   :  { %v141_v50 = vmul.f32 1.442695, %v138_v49 }
 0x17b   :  { %249 = vpow2.f32 %v141_v50 }
 0x184   :  { %v248_v51 = vpop.eup %247 }
 0x185   :  { %143 = vadd.xlane.f32.xlu1 %v248_v51 }
 0x188   :  { %v250_v52 = vpop.eup %249 }
 0x189   :  { %145 = vadd.xlane.f32.xlu1 %v250_v52 }
 0x20e   :  { %v144_v53 = vpop.xlane.xlu1 %143 }
 0x20f   :  { %251 = vlog2.f32 %v144_v53 }
 0x212   :  { %v146_v54 = vpop.xlane.xlu1 %145 }
 0x213   :  { %253 = vlog2.f32 %v146_v54 }
 0x21c   :  { %v252_v55 = vpop.eup %251 }
 0x21d   :  { %v148_v56 = vmul.f32 0.6931472, %v252_v55 }
 0x21f   :  { %v151_v57 = vadd.f32 %v148_v56, %v134_v45 }
 0x220   :  { %v254_v58 = vpop.eup %253 }
 0x221   :  { %v153_v59 = vsub.f32 %v125_v42, %v151_v57  ;;  %v150_v60 = vmul.f32 0.6931472, %v254_v58 }
 0x223   :  { %155 = vst [vmem:[#allocation2] sm:$0xff] %v153_v59  ;;  %v152_v61 = vadd.f32 %v150_v60, %v136_v48 }
 0x225   :  { %v154_v62 = vsub.f32 %v130_v44, %v152_v61 }
 0x227   :  { %156 = vst [vmem:[#allocation2 + $0x8] sm:$0xff] %v154_v62 }
 0x228   :  { %266 = shalt.err (!%p263_p4)
}
 0x229   :  { %s278_s5 = smov 128   ;;  %s279_s6 = smov 8  }
 0x22a   :  { %168 = dma.vmem_to_hbm [thread:$0]  %s163_s2, 256, %s417_s3, [#allocation3], %s278_s5, %s278_s5, %s279_s6  }
 0x22b   :  { %275 = dma.done.wait [#allocation3], 256  }
 0x22c   :  { %276 = vsyncadd [#allocation3], 4294967040 }
 0x22d   :  { %172 = vsyncpa [#allocation3], 1 }

// kernel: graphsage_pp_damc_forward.2
= control target key start
LH: loop header
LB: loop body
LE: loop exit
PB: predicated region body
PF: predicated region fallthrough
CT: control target
= control target key end

     0   :  { %s2151_s0 = inlined_call_operand.hbm [shape: bf16[2,16,16], index: 0, kind: input, shape index: {}]   ;;  %s2152_s1 = inlined_call_operand.hbm [shape: f32[16,64], index: 1, kind: input, shape index: {}, may-alias: {1,2}]   ;;  %s2153_s2 = inlined_call_operand.hbm [shape: f32[16,64], index: 2, kind: input, shape index: {}, may-alias: {1,2}]   ;;  %s2154_s3 = inlined_call_operand.hbm [shape: f32[2,192,128], index: 3, kind: input, shape index: {}]   ;;  %s2155_s4 = inlined_call_operand.hbm [shape: f32[2,1,128], index: 4, kind: input, shape index: {}]   ;;  %s2156_s5 = inlined_call_operand.vmem [shape: f32[16,256], index: 5, kind: output, shape index: {}]  }
   0x1   :  { %2163 = sst [smem:[#allocation19_spill]] %s2152_s1 }
   0x2   :  { %2164 = sst [smem:[#allocation20_spill]] %s2154_s3 }
   0x3   :  { %10 = vsyncpa [#allocation6], 0 }
   0x4   :  { %12 = vsyncpa [#allocation6 + $0x1], 0 }
   0x5   :  { %13 = vsyncpa [#allocation8], 0 }
   0x6   :  { %14 = vsyncpa [#allocation11], 0 }
   0x7   :  { %16 = vsyncpa [#allocation11 + $0x1], 0  ;;  %s1746_s18 = smov 0   ;;  %s1748_s19 = smov 0  }
   0x8   :  { %s1750_s20 = smov 0   ;;  %s1752_s21 = smov 0  }
   0x9   :  { %s1754_s22 = smov 0   ;;  %s1756_s23 = smov 0  }
   0xa LB: > { %s1775_s24 = sadd.s32 4294967295, %s1701_s23   ;;  %s52_s25 = sadd.s32 1, %s1689_s20  ;;  %s1701_s23 = sphi %s1756_s23, %s22_s23   ;;  %s1697_s22 = sphi %s1754_s22, %s2187_s22   ;;  %s1693_s21 = sphi %s1752_s21, %s2186_s21   ;;  %s1689_s20 = sphi %s1750_s20, %s2185_s20   ;;  %s1685_s19 = sphi %s1748_s19, %s2184_s19   ;;  %s1681_s18 = sphi %s1746_s18, %s2183_s18  }
   0xb   : > { %p59_p0 = scmp.ne.s32.totalorder %s1689_s20, %s1685_s19  ;;  %p60_p1 = scmp.eq.s32.totalorder %s1701_s23, 0 }
   0xc   : > { %p65_p2 = scmp.ne.s32.totalorder %s1685_s19, %s1681_s18  ;;  %p2157_p3 = scmp.eq.s32.totalorder %s1775_s24, 0 }
   0xd   : > { %p1783_p4 = por %p60_p1, %p59_p0  ;;  %p195_p5 = scmp.eq.s32.totalorder %s1775_s24, 1 }
   0xe   : > { %p1790_p6 = por %p2157_p3, %p65_p2  ;;  %p1365_p7 = scmp.ge.s32.totalorder %s1701_s23, 1 }
   0xf   : > { %p1795_p8 = por %p195_p5, %p59_p0  ;;  %p208_p9 = scmp.lt.s32.totalorder %s1701_s23, 3 }
  0x10   : > { %s1703_s30 = smov [#allocation7]   ;;  %s37_s8 = sadd.s32 1, %s1697_s22 }
  0x11   : > { %s2167_s28 = scalar_select %p1795_p8, 1, 0 }
  0x12   : > { %p1800_p10 = pnand %p1365_p7, %p208_p9  ;;  %s223_s6 = sshll.u32 %s1703_s30, 4  ;;  %s224_s6 = int_to_ptr.vmem [resolvable:$true] %s223_s6 }
  0x13   : > { %p1440_p13 = scmp.lt.s32.totalorder %s1701_s23, 2  ;;  %p1814_p0 = scmp.ge.s32.totalorder %s37_s8, 2 }
  0x14   : > { %p1421_p11 = pneg %p1800_p10  ;;  %s1518_s10 = scalar_lea.vmem %s224_s6, 256 }
  0x15   : > { %p1519_p2 = scmp.ne.s32.totalorder %s224_s6, %s1518_s10  ;;  %p1526_p9 = scmp.lt.s32.totalorder %s224_s6, %s224_s6 }
  0x16   : > { %p1808_p12 = pnand %p1421_p11, %p2157_p3  ;;  %p1527_p11 = scmp.lt.s32.totalorder %s1518_s10, %s1518_s10 }
  0x18   : > { %p1509_p1 = pneg %p1808_p12  ;;  %p1528_p3 = por %p1527_p11, %p1526_p9 }
  0x1a   : > { %p1521_p5 = pnand %p1519_p2, %p1509_p1 }
  0x1c   : > { %p1522_p7 = pneg %p1521_p5 }
  0x1e   : > { %p1529_p8 = pnand %p1528_p3, %p1522_p7 }
  0x20   : > { %1532 = shalt.err (!%p1529_p8)
}
  0x21   : > { %s2158_s11 = smov 128   ;;  %s2160_s12 = smov 8  }
  0x22   : > { %s2171_s1 = sld [smem:[#allocation19_spill]]  ;;  %s2189_s8 = smov (%p1814_p0, %s37_s8), 0 }
  0x23   : > { %2172 = sst [smem:[#allocation17_spill]] %s2189_s8  ;;  %s1836_s15 = sand.u32 1, %s1689_s20  }
  0x24   : > { %p1842_p3 = pnand %p1440_p13, %p1783_p4  ;;  %s45_s17 = ssub.s32 %s1697_s22, %s2189_s8 }
  0x25   : > { %s277_s18 = sand.u32 1, %s1701_s23   ;;  %p50_p8 = scmp.eq.s32.totalorder %s45_s17, 0 }
  0x26   : > { %s1404_s30 = smul.u32 192, %s1836_s15  ;;  %s2175_s3 = sld [smem:[#allocation20_spill]] }
  0x27   : > { %s1405_s9 = smul.u32 3072, %s1697_s22  ;;  %p1535_p4 = pneg %p1842_p3 }
  0x28   : > { %1424 = dma.hbm_to_vmem [thread:$0]  (!%p1808_p12), %s2171_s1, 256, %s224_s6, [#allocation8], %s2158_s11, %s2158_s11, %s2160_s12  }
  0x29   : > { %s1853_s6 = scalar_select %p50_p8, %s1689_s20, %s52_s25  }
  0x2a   : > { %s281_s10 = scalar_lea.vmem [#allocation10], %s1404_s30  ;;  %s1859_s12 = scalar_lea.sflag [#allocation11], %s277_s18 }
  0x2b   : > { %2174 = sst [smem:[#allocation18_spill]] %s1853_s6  ;;  %s288_s13 = sshll.u32 %s281_s10, 4  ;;  %s289_s13 = int_to_ptr.vmem [resolvable:$true] %s288_s13 }
  0x2c   : > { %s287_s11 = scalar_lea.hbm %s2175_s3, %s1405_s9  ;;  %s1546_s1 = scalar_lea.vmem %s289_s13, 3072 }
  0x2d   : > { %p1547_p13 = scmp.ne.s32.totalorder %s289_s13, %s1546_s1  ;;  %s1706_s25 = smov [#allocation10]  }
  0x2e   : > { %s1551_s17 = sshll.u32 %s1706_s25, 4  ;;  %s1552_s17 = int_to_ptr.vmem [resolvable:$false] %s1551_s17 }
  0x2f   : > { %p1549_p0 = pnand %p1547_p13, %p1535_p4  ;;  %s1553_s30 = scalar_lea.vmem %s1552_s17, 6144 }
  0x30   : > { %p1554_p5 = scmp.lt.s32.totalorder %s289_s13, %s1552_s17  ;;  %p1555_p7 = scmp.lt.s32.totalorder %s1553_s30, %s1546_s1 }
  0x31   : > { %p1550_p2 = pneg %p1549_p0 }
  0x32   : > { %p1556_p9 = por %p1555_p7, %p1554_p5 }
  0x34   : > { %p1557_p11 = pnand %p1556_p9, %p1550_p2 }
  0x36   : > { %1560 = shalt.err (!%p1557_p11)
}
  0x37   : > { %s2176_s18 = smov 8   ;;  %s2177_s9 = smov 128  }
  0x38   : > { %1434 = dma.hbm_to_vmem [thread:$0]  (!%p1842_p3), %s287_s11, 3072, %s289_s13, %s1859_s12, %s2177_s9, %s2177_s9, %s2176_s18  }
  0x39   : > { %s1707_s10 = smov [#allocation9]   ;;  %s1369_s26 = sshll.u32 %s1836_s15, 3 }
  0x3a   : > { %s239_s14 = sshll.u32 %s1707_s10, 4  ;;  %s240_s14 = int_to_ptr.vmem [resolvable:$true] %s239_s14 }
  0x3b   : > { %s1572_s25 = scalar_lea.vmem %s240_s14, 256  ;;  %p1580_p2 = scmp.lt.s32.totalorder %s240_s14, %s240_s14 }
  0x3c   : > { %p1573_p8 = scmp.ne.s32.totalorder %s240_s14, %s1572_s25  ;;  %p1581_p5 = scmp.lt.s32.totalorder %s1572_s25, %s1572_s25 }
  0x3e   : > { %p1575_p13 = pnand %p1573_p8, %p1509_p1  ;;  %p1582_p7 = por %p1581_p5, %p1580_p2 }
  0x40   : > { %p1576_p0 = pneg %p1575_p13 }
  0x42   : > { %p1583_p9 = pnand %p1582_p7, %p1576_p0 }
  0x44   : > { %1586 = shalt.err (!%p1583_p9)
}
  0x45   : > { %1427 = dma.hbm_to_vmem [thread:$0]  (!%p1808_p12), %s2153_s2, 256, %s240_s14, [#allocation8], %s2177_s9, %s2177_s9, %s2176_s18  }
  0x46   : > { %s1388_s13 = sshll.u32 %s1697_s22, 7  ;;  %s257_s25 = scalar_lea.vmem [#allocation5], %s1369_s26 }
  0x47   : > { %s266_s10 = scalar_lea.hbm %s2151_s0, %s1388_s13  ;;  %s267_s3 = sshll.u32 %s257_s25, 4  ;;  %s268_s3 = int_to_ptr.vmem [resolvable:$true] %s267_s3 }
  0x48   : > { %s254_s8 = scalar_lea.sflag [#allocation6], %s1836_s15  ;;  %s1600_s7 = scalar_lea.vmem %s268_s3, 128 }
  0x49   : > { %p1601_p1 = scmp.ne.s32.totalorder %s268_s3, %s1600_s7  ;;  %s1708_s1 = smov [#allocation5]  }
  0x4a   : > { %s1605_s11 = sshll.u32 %s1708_s1, 4  ;;  %s1606_s11 = int_to_ptr.vmem [resolvable:$false] %s1605_s11 }
  0x4b   : > { %p1603_p11 = pnand %p1601_p1, %p1535_p4  ;;  %s1607_s6 = scalar_lea.vmem %s1606_s11, 256 }
  0x4c   : > { %p1608_p12 = scmp.lt.s32.totalorder %s268_s3, %s1606_s11  ;;  %p1609_p13 = scmp.lt.s32.totalorder %s1607_s6, %s1600_s7 }
  0x4d   : > { %p1604_p8 = pneg %p1603_p11 }
  0x4e   : > { %p1610_p0 = por %p1609_p13, %p1608_p12 }
  0x50   : > { %p1611_p2 = pnand %p1610_p0, %p1604_p8 }
  0x52   : > { %1614 = shalt.err (!%p1611_p2)
}
  0x53   : > { %s1709_s18 = smov 64   ;;  %s1710_s9 = smov 4  }
  0x54   : > { %1431 = dma.hbm_to_vmem [thread:$0]  (!%p1842_p3), %s266_s10, 128, %s268_s3, %s254_s8, %s1709_s18, %s1709_s18, %s1710_s9  }
  0x55   : > { %s1373_s14 = sshll.u32 %s1697_s22, 4  ;;  %s301_s26 = scalar_lea.vmem [#allocation12], %s1836_s15 }
  0x56   : > { %s308_s13 = sshll.u32 %s301_s26, 4  ;;  %s306_s25 = scalar_lea.hbm %s2155_s4, %s1373_s14  ;;  %s309_s13 = int_to_ptr.vmem [resolvable:$true] %s308_s13 }
  0x57   : > { %s1628_s6 = scalar_lea.vmem %s309_s13, 16  ;;  %s1711_s7 = smov [#allocation12]  }
  0x58   : > { %p1629_p5 = scmp.ne.s32.totalorder %s309_s13, %s1628_s6  ;;  %s1633_s1 = sshll.u32 %s1711_s7, 4  ;;  %s1634_s1 = int_to_ptr.vmem [resolvable:$false] %s1633_s1 }
  0x59   : > { %s1635_s11 = scalar_lea.vmem %s1634_s1, 32  ;;  %p1636_p1 = scmp.lt.s32.totalorder %s309_s13, %s1634_s1 }
  0x5a   : > { %p1631_p7 = pnand %p1629_p5, %p1535_p4  ;;  %p1637_p11 = scmp.lt.s32.totalorder %s1635_s11, %s1628_s6 }
  0x5c   : > { %p1632_p9 = pneg %p1631_p7  ;;  %p1638_p8 = por %p1637_p11, %p1636_p1 }
  0x5e   : > { %p1639_p12 = pnand %p1638_p8, %p1632_p9 }
  0x60   : > { %1642 = shalt.err (!%p1639_p12)
}
  0x61   : > { %1437 = dma.hbm_to_vmem [thread:$0]  (!%p1842_p3), %s306_s25, 16, %s309_s13, %s1859_s12  }
  0x62   : > { %317 = sbr.rel (%p1800_p10) target bundleno = 716 (0x2cc), region = 40  ;;  %s1908_s3 = sand.u32 (!%p1800_p10), 1, %s1685_s19  }
  0x63   : > { %s1375_s8 = sshll.u32 (!%p1800_p10), %s1908_s3, 3  ;;  %s320_s15 = scalar_lea.sflag (!%p1800_p10), [#allocation6], %s1908_s3 }
  0x64   : > { %s323_s10 = scalar_lea.vmem (!%p1800_p10), [#allocation5], %s1375_s8 }
  0x67   : > { %1668 = dma.done.wait (%p1790_p6), %s320_s15, 128  }
  0x68   : > { %1670 = vsyncadd (%p1790_p6), %s320_s15, 4294967168  ;;  %p2178_p4 = scmp.eq.s32.totalorder %s1775_s24, 0 }
  0x6a   : > { %1672 = dma.done.wait (%p2178_p4), [#allocation8], 512   ;;  %p2179_p3 = pmov %p2178_p4 }
  0x6b   : > { %s336_s29 = sand.u32 1, %s1775_s24   ;;  %s1406_s12 = smul.u32 192, %s1908_s3 }
  0x6c   : > { %1674 = vsyncadd (%p2179_p3), [#allocation8], 4294966784  ;;  %s337_s16 = scalar_lea.sflag [#allocation11], %s336_s29 }
  0x6d   : > { %s1922_s18 = scalar_lea.vmem [#allocation10], %s1406_s12 }
  0x6e   : > { %1676 = dma.done.wait (%p1790_p6), %s337_s16, 3088  }
  0x6f   : > { %1678 = vsyncadd (%p1790_p6), %s337_s16, 4294964208  ;;  %v512_v0 = vlaneseq  ;;  %p399_p10 = scmp.gt.s32.totalorder %s1693_s21, 0  ;;  %v1390_v4 = vld [vmem:[%s323_s10] sm:$0xff]   ;;  %vm412_vm0 = vcmask 130048   ;;  %v406_v5 = vld [vmem:[#allocation7 + $0x8] sm:$0xff]  ;;  %vm391_vm1 = vcmask 523264  }
  0x70   : > { %v405_v6 = vld [vmem:[#allocation7] sm:$0xff]  ;;  %v1391_v7 = vunpack.c.l.bf16 %v1390_v4  ;;  %v1934_v8 = vunpack.c.h.bf16 %v1390_v4  ;;  %vm396_vm2 = vcmask 7168   ;;  %v1712_v15 = vmov 0.0   ;;  %s1715_s24 = smov 64   ;;  %s1378_s27 = sshll.u32 %s1908_s3, 4 }
  0x71   : > { %v1929_v1 = vshrl.u32 %v512_v0, 7  ;;  %s400_s9 = scalar_select %p399_p10, 0.0, -inf  ;;  %397 = vst.msk [vmem:[#allocation4] sm:$0xff] %vm396_vm2, %v1712_v15  ;;  %398 = vst.msk [vmem:[#allocation4 + $0x8] sm:$0xff] %vm396_vm2, %v1712_v15  ;;  %1095 = vmatprep.subr.mxu1 %v1712_v15  ;;  %v1713_v21 = vmov 0  }
  0x72   : > { %v501_v10 = vsel %vm412_vm0, %v1391_v7, 0.0  ;;  %1401 = vmatprep.mubr.msk.f32.mxu0 %vm412_vm0, %v1391_v7  ;;  %v504_v13 = vsel %vm412_vm0, %v1934_v8, 0.0  ;;  %392 = vst.msk [vmem:[#allocation2] sm:$0xff] %vm391_vm1, %v1712_v15  ;;  %393 = vst.msk [vmem:[#allocation2 + $0x8] sm:$0xff] %vm391_vm1, %v1712_v15  ;;  %1501 = vset.pattern.permute.xlu1 %v1713_v21  ;;  %v1714_v35 = vmov -inf   ;;  %s348_s14 = scalar_lea.vmem [#allocation12], %s1908_s3 }
  0x73   : > { %v514_v2 = vsub.s32 0, %v1929_v1  ;;  %v1932_v3 = vstv %s400_s9  ;;  %502 = vadd.xlane.f32.xlu0 %v501_v10  ;;  %v525_v14 = vsub.s32 1, %v1929_v1  ;;  %v536_v17 = vsub.s32 2, %v1929_v1  ;;  %394 = vst.msk [vmem:[#allocation3] sm:$0xff] %vm391_vm1, %v1714_v35  ;;  %395 = vst.msk [vmem:[#allocation3 + $0x8] sm:$0xff] %vm391_vm1, %v1714_v35  ;;  %s382_s26 = scalar_lea.vmem [#allocation13], %s1378_s27 }
  0x74   : > { %v1937_v9 = vmax.f32 %v406_v5, %v1932_v3  ;;  %v1942_v12 = vmax.f32 %v405_v6, %v1932_v3  ;;  %v547_v19 = vsub.s32 3, %v1929_v1  ;;  %1502 = vset.pattern.permute.xlu0 %v1713_v21  ;;  %v558_v22 = vsub.s32 4, %v1929_v1  ;;  %p2180_p6 = scmp.ne.s32.totalorder %s2167_s28, 0 }
  0x75   : > { %v515_v11 = vrot.slane %v1391_v7, %v514_v2  ;;  %v526_v16 = vrot.slane %v1391_v7, %v525_v14  ;;  %v537_v18 = vrot.slane %v1391_v7, %v536_v17  ;;  %v569_v24 = vsub.s32 5, %v1929_v1  ;;  %s1385_s13 = sshll.u32 (%p2180_p6), %s1693_s21, 3 }
  0x76   : > { %1397 = vmatprep.subr.mxu0 %v1937_v9  ;;  %v548_v20 = vrot.slane %v1391_v7, %v547_v19  ;;  %v559_v23 = vrot.slane %v1391_v7, %v558_v22  ;;  %v603_v26 = vrot.slane %v1934_v8, %v514_v2  ;;  %v614_v27 = vrot.slane %v1934_v8, %v525_v14  ;;  %s1183_s25 = scalar_lea.vmem (%p2180_p6), %s2156_s5, %s1385_s13 }
  0x77   : > { %517 = vbcast.lane.b32.xlu1 %v515_v11, 256  ;;  %1398 = vmatpush3.msra.mxu0 %v1937_v9  ;;  %v570_v25 = vrot.slane %v1391_v7, %v569_v24  ;;  %v580_v28 = vsub.s32 6, %v1929_v1  ;;  %v625_v30 = vrot.slane %v1934_v8, %v536_v17  ;;  %v591_v31 = vsub.s32 7, %v1929_v1 }
  0x78   : > { %1399 = vmatprep.subr.mxu0 %v1942_v12  ;;  %505 = vadd.xlane.f32.xlu0 %v504_v13  ;;  %v636_v33 = vrot.slane %v1934_v8, %v547_v19  ;;  %v647_v34 = vrot.slane %v1934_v8, %v558_v22  ;;  %v658_v36 = vrot.slane %v1934_v8, %v569_v24  ;;  %v499_v49 = vld [vmem:[#allocation4] sm:$0xff]  ;;  %v500_v58 = vld [vmem:[#allocation4 + $0x8] sm:$0xff] }
  0x79   : > { %1400 = vmatpush3.msra.mxu0 %v1942_v12  ;;  %v581_v29 = vrot.slane %v1391_v7, %v580_v28  ;;  %v592_v32 = vrot.slane %v1391_v7, %v591_v31  ;;  %v669_v37 = vrot.slane %v1934_v8, %v580_v28  ;;  %v680_v38 = vrot.slane %v1934_v8, %v591_v31 }
  0x7a   : > { %1402 = vmatmul.mubr.msk.f32.vlgmr.msra.gmra.mxu0 %vm412_vm0, %v1934_v8 }
  0x7b   : > { %521 = vbcast.lane.b32.xlu1 %v515_v11, 264 }
  0x7f   : > { %532 = vbcast.lane.b32.xlu1 %v526_v16, 264 }
  0x83   : > { %539 = vbcast.lane.b32.xlu1 %v537_v18, 256 }
  0x87   : > { %543 = vbcast.lane.b32.xlu1 %v537_v18, 264 }
  0x8b   : > { %550 = vbcast.lane.b32.xlu1 %v548_v20, 256 }
  0x8e   : > { %528 = vbcast.lane.b32.xlu0 %v526_v16, 256 }
  0x8f   : > { %554 = vbcast.lane.b32.xlu1 %v548_v20, 264 }
  0x92   : > { %565 = vbcast.lane.b32.xlu0 %v559_v23, 264 }
  0x93   : > { %561 = vbcast.lane.b32.xlu1 %v559_v23, 256 }
  0x96   : > { %576 = vbcast.lane.b32.xlu0 %v570_v25, 264 }
  0x97   : > { %572 = vbcast.lane.b32.xlu1 %v570_v25, 256 }
  0x9a   : > { %609 = vbcast.lane.b32.xlu0 %v603_v26, 264 }
  0x9b   : > { %605 = vbcast.lane.b32.xlu1 %v603_v26, 256 }
  0x9e   : > { %620 = vbcast.lane.b32.xlu0 %v614_v27, 264 }
  0x9f   : > { %616 = vbcast.lane.b32.xlu1 %v614_v27, 256 }
  0xa2   : > { %587 = vbcast.lane.b32.xlu0 %v581_v29, 264 }
  0xa3   : > { %583 = vbcast.lane.b32.xlu1 %v581_v29, 256 }
  0xa6   : > { %631 = vbcast.lane.b32.xlu0 %v625_v30, 264 }
  0xa7   : > { %627 = vbcast.lane.b32.xlu1 %v625_v30, 256 }
  0xaa   : > { %598 = vbcast.lane.b32.xlu0 %v592_v32, 264 }
  0xab   : > { %594 = vbcast.lane.b32.xlu1 %v592_v32, 256 }
  0xae   : > { %642 = vbcast.lane.b32.xlu0 %v636_v33, 264 }
  0xaf   : > { %638 = vbcast.lane.b32.xlu1 %v636_v33, 256 }
  0xb2   : > { %653 = vbcast.lane.b32.xlu0 %v647_v34, 264 }
  0xb3   : > { %649 = vbcast.lane.b32.xlu1 %v647_v34, 256 }
  0xb6   : > { %664 = vbcast.lane.b32.xlu0 %v658_v36, 264 }
  0xb7   : > { %660 = vbcast.lane.b32.xlu1 %v658_v36, 256 }
  0xba   : > { %675 = vbcast.lane.b32.xlu0 %v669_v37, 264 }
  0xbb   : > { %671 = vbcast.lane.b32.xlu1 %v669_v37, 256 }
  0xbe   : > { %686 = vbcast.lane.b32.xlu0 %v680_v38, 264 }
  0xbf   : > { %682 = vbcast.lane.b32.xlu1 %v680_v38, 256 }
  0xe9   : > { %v518_v39 = vpop.permute.xlu1 %517 }
  0xea   : > { %vm688_vm3 = vcmp.gt.f32.partialorder %v518_v39, 0.0 }
  0xeb   : > { %v784_v43 = vsel %vm688_vm3, %v1942_v12, -inf }
  0xec   : > { %v818_v46 = vsel %vm391_vm1, %v784_v43, -inf }
  0xed   : > { %v522_v40 = vpop.permute.xlu1 %521 }
  0xee   : > { %vm689_vm4 = vcmp.gt.f32.partialorder %v522_v40, 0.0 }
  0xef   : > { %v785_v44 = vsel %vm689_vm4, %v1937_v9, -inf }
  0xf0   : > { %v819_v47 = vsel %vm391_vm1, %v785_v44, -inf }
  0xf1   : > { %v533_v41 = vpop.permute.xlu1 %532  ;;  %v820_v48 = vmax.f32 %v818_v46, %v819_v47 }
  0xf2   : > { %vm691_vm8 = vcmp.gt.f32.partialorder %v533_v41, 0.0 }
  0xf3   : > { %v821_v57 = vrot.slane %v820_v48, 4  ;;  %v787_v2 = vsel %vm691_vm8, %v1937_v9, -inf  ;;  %vm978_vm8 = vcmask 1041409  }
  0xf4   : > { %v828_v10 = vsel %vm391_vm1, %v787_v2, -inf }
  0xf5   : > { %v540_v42 = vpop.permute.xlu1 %539  ;;  %v822_v1 = vmax.f32 %v820_v48, %v821_v57 }
  0xf6   : > { %vm692_vm5 = vcmp.gt.f32.partialorder %v540_v42, 0.0 }
  0xf7   : > { %v788_v50 = vsel %vm692_vm5, %v1942_v12, -inf  ;;  %v823_v13 = vrot.slane %v822_v1, 2 }
  0xf8   : > { %v836_v55 = vsel %vm391_vm1, %v788_v50, -inf }
  0xf9   : > { %v544_v45 = vpop.permute.xlu1 %543  ;;  %v824_v28 = vmax.f32 %v822_v1, %v823_v13  ;;  %v1073_v13 = vld [vmem:[%s1922_s18 + $0x78] sm:$0xff] }
  0xfa   : > { %vm693_vm6 = vcmp.gt.f32.partialorder %v544_v45, 0.0  ;;  %1096 = vmatpush1.msra.mxu1 %v1073_v13 }
  0xfb   : > { %v789_v51 = vsel %vm693_vm6, %v1937_v9, -inf  ;;  %1097 = vmatprep.subr.mxu1 %v1712_v15 }
  0xfc   : > { %v503_v53 = vpop.xlane.xlu0 %502  ;;  %v837_v56 = vsel %vm391_vm1, %v789_v51, -inf }
  0xfd   : > { %v551_v52 = vpop.permute.xlu1 %550  ;;  %v507_v54 = vadd.f32 %v503_v53, %v499_v49  ;;  %v838_v62 = vmax.f32 %v836_v55, %v837_v56  ;;  %v825_v53 = vrot.slane %v824_v28, 1 }
  0xfe   : > { %vm694_vm7 = vcmp.gt.f32.partialorder %v551_v52, 0.0 }
  0xff   : > { %510 = vst.msk [vmem:[#allocation4] sm:$0xff] %vm396_vm2, %v507_v54  ;;  %v790_v60 = vsel %vm694_vm7, %v1942_v12, -inf  ;;  %v839_v7 = vrot.slane %v838_v62, 4  ;;  %v826_v2 = vmax.f32 %v824_v28, %v825_v53 }
 0x100   : > { %v845_v4 = vsel %vm391_vm1, %v790_v60, -inf }
 0x101   : > { %v555_v59 = vpop.permute.xlu1 %554  ;;  %v506_v61 = vpop.xlane.xlu0 %505  ;;  %v840_v22 = vmax.f32 %v838_v62, %v839_v7 }
 0x102   : > { %vm695_vm9 = vcmp.gt.f32.partialorder %v555_v59, 0.0  ;;  %v508_v0 = vadd.f32 %v506_v61, %v500_v58 }
 0x103   : > { %v791_v63 = vsel %vm695_vm9, %v1937_v9, -inf  ;;  %v841_v36 = vrot.slane %v840_v22, 2  ;;  %vm980_vm9 = vcmask 1042434  }
 0x104   : > { %v846_v5 = vsel %vm391_vm1, %v791_v63, -inf  ;;  %511 = vst.msk [vmem:[#allocation4 + $0x8] sm:$0xff] %vm396_vm2, %v508_v0 }
 0x105   : > { %v562_v6 = vpop.permute.xlu1 %561  ;;  %v529_v8 = vpop.permute.xlu0 %528  ;;  %v847_v11 = vmax.f32 %v845_v4, %v846_v5  ;;  %v842_v54 = vmax.f32 %v840_v22, %v841_v36  ;;  %v1071_v22 = vld [vmem:[%s1922_s18 + $0x68] sm:$0xff] }
 0x106   : > { %vm696_vm10 = vcmp.gt.f32.partialorder %v562_v6, 0.0  ;;  %vm690_vm11 = vcmp.gt.f32.partialorder %v529_v8, 0.0  ;;  %v1008_v16 = vld [vmem:[#allocation4] sm:$0xff] }
 0x107   : > { %v786_v14 = vsel %vm690_vm11, %v1942_v12, -inf  ;;  %v792_v17 = vsel %vm696_vm10, %v1942_v12, -inf  ;;  %vm1028_vm12 = vcmp.gt.f32.partialorder %v1008_v16, 0.0  ;;  %v1010_v20 = vmax.f32 %v1008_v16, 1.0 }
 0x108   : > { %v827_v19 = vsel %vm391_vm1, %v786_v14, -inf  ;;  %v1032_v24 = vsel %vm1028_vm12, 1, %v1713_v21  ;;  %v848_v26 = vrot.slane %v847_v11, 4  ;;  %v854_v27 = vsel %vm391_vm1, %v792_v17, -inf  ;;  %v1072_v14 = vld [vmem:[%s1922_s18 + $0x70] sm:$0xff] }
 0x109   : > { %v573_v18 = vpop.permute.xlu1 %572  ;;  %v829_v23 = vmax.f32 %v827_v19, %v828_v10  ;;  %v566_v25 = vpop.permute.xlu0 %565  ;;  %1035 = vperm.xlu1 %1501, %v1032_v24   ;;  %1503 = vrcp.f32 %v1010_v20  ;;  %v843_v4 = vrot.slane %v842_v54, 1  ;;  %vm982_vm10 = vcmask 1043459   ;;  %1098 = vmatpush1.msra.mxu1 %v1072_v14  ;;  %v1065_v14 = vld [vmem:[%s1922_s18 + $0x38] sm:$0xff] }
 0x10a   : > { %vm698_vm13 = vcmp.gt.f32.partialorder %v573_v18, 0.0  ;;  %vm697_vm14 = vcmp.gt.f32.partialorder %v566_v25, 0.0  ;;  %v849_v41 = vmax.f32 %v847_v11, %v848_v26  ;;  %1099 = vmatprep.subr.mxu1 %v1712_v15 }
 0x10b   : > { %v830_v29 = vrot.slane %v829_v23, 4  ;;  %v793_v30 = vsel %vm697_vm14, %v1937_v9, -inf  ;;  %v1009_v31 = vld [vmem:[#allocation4 + $0x8] sm:$0xff]  ;;  %v794_v32 = vsel %vm698_vm13, %v1942_v12, -inf  ;;  %1100 = vmatpush1.msra.mxu1 %v1071_v22 }
 0x10c   : > { %v855_v34 = vsel %vm391_vm1, %v793_v30, -inf  ;;  %vm1029_vm15 = vcmp.gt.f32.partialorder %v1009_v31, 0.0  ;;  %v1011_v35 = vmax.f32 %v1009_v31, 1.0  ;;  %v863_v42 = vsel %vm391_vm1, %v794_v32, -inf  ;;  %v1070_v32 = vld [vmem:[%s1922_s18 + $0x60] sm:$0xff]  ;;  %1101 = vmatprep.subr.mxu1 %v1712_v15 }
 0x10d   : > { %v606_v33 = vpop.permute.xlu1 %605  ;;  %v831_v37 = vmax.f32 %v829_v23, %v830_v29  ;;  %v856_v38 = vmax.f32 %v854_v27, %v855_v34  ;;  %v1033_v39 = vsel %vm1029_vm15, 1, %v1713_v21  ;;  %v577_v40 = vpop.permute.xlu0 %576  ;;  %v850_v21 = vrot.slane %v849_v41, 2  ;;  %1102 = vmatpush1.msra.mxu1 %v1070_v32 }
 0x10e   : > { %vm704_vm0 = vcmp.gt.f32.partialorder %v606_v33, 0.0  ;;  %1038 = vperm.xlu0 %1502, %v1033_v39   ;;  %1505 = vrcp.f32 %v1011_v35  ;;  %vm699_vm2 = vcmp.gt.f32.partialorder %v577_v40, 0.0  ;;  %v844_v29 = vmax.f32 %v842_v54, %v843_v4  ;;  %1103 = vmatprep.subr.mxu1 %v1712_v15 }
 0x10f   : > { %v832_v43 = vrot.slane %v831_v37, 2  ;;  %v857_v44 = vrot.slane %v856_v38, 4  ;;  %v795_v45 = vsel %vm699_vm2, %v1937_v9, -inf  ;;  %v800_v46 = vsel %vm704_vm0, %v1942_v12, -inf }
 0x110   : > { %v864_v48 = vsel %vm391_vm1, %v795_v45, -inf  ;;  %v890_v52 = vsel %vm391_vm1, %v800_v46, -inf  ;;  %v851_v0 = vmax.f32 %v849_v41, %v850_v21  ;;  %v1069_v41 = vld [vmem:[%s1922_s18 + $0x58] sm:$0xff]  ;;  %vm984_vm15 = vcmask 1044484  }
 0x111   : > { %v617_v47 = vpop.permute.xlu1 %616  ;;  %v833_v49 = vmax.f32 %v831_v37, %v832_v43  ;;  %v865_v50 = vmax.f32 %v863_v42, %v864_v48  ;;  %v610_v51 = vpop.permute.xlu0 %609  ;;  %v858_v55 = vmax.f32 %v856_v38, %v857_v44  ;;  %1104 = vmatpush1.msra.mxu1 %v1069_v41  ;;  %vm986_vm0 = vcmask 1045509  }
 0x112   : > { %vm706_vm3 = vcmp.gt.f32.partialorder %v617_v47, 0.0  ;;  %vm705_vm4 = vcmp.gt.f32.partialorder %v610_v51, 0.0  ;;  %v852_v19 = vrot.slane %v851_v0, 1  ;;  %1105 = vmatprep.subr.mxu1 %v1712_v15 }
 0x113   : > { %v801_v56 = vsel %vm705_vm4, %v1937_v9, -inf  ;;  %v834_v58 = vrot.slane %v833_v49, 1  ;;  %v802_v60 = vsel %vm706_vm3, %v1942_v12, -inf  ;;  %v866_v61 = vrot.slane %v865_v50, 4 }
 0x114   : > { %v891_v59 = vsel %vm391_vm1, %v801_v56, -inf  ;;  %v859_v5 = vrot.slane %v858_v55, 2  ;;  %v899_v6 = vsel %vm391_vm1, %v802_v60, -inf  ;;  %v853_v38 = vmax.f32 %v851_v0, %v852_v19 }
 0x115   : > { %v584_v57 = vpop.permute.xlu1 %583  ;;  %v892_v62 = vmax.f32 %v890_v52, %v891_v59  ;;  %v621_v63 = vpop.permute.xlu0 %620  ;;  %v835_v8 = vmax.f32 %v833_v49, %v834_v58  ;;  %v867_v16 = vmax.f32 %v865_v50, %v866_v61  ;;  %v1068_v50 = vld [vmem:[%s1922_s18 + $0x50] sm:$0xff] }
 0x116   : > { %vm700_vm5 = vcmp.gt.f32.partialorder %v584_v57, 0.0  ;;  %vm707_vm6 = vcmp.gt.f32.partialorder %v621_v63, 0.0  ;;  %v1504_v1 = vpop.eup %1503  ;;  %v860_v24 = vmax.f32 %v858_v55, %v859_v5  ;;  %v1067_v57 = vld [vmem:[%s1922_s18 + $0x48] sm:$0xff]  ;;  %1106 = vmatpush1.msra.mxu1 %v1068_v50 }
 0x117   : > { %1018 = vperm.xlu1 %1501, %v1504_v1   ;;  %v803_v10 = vsel %vm707_vm6, %v1937_v9, -inf  ;;  %v796_v11 = vsel %vm700_vm5, %v1942_v12, -inf  ;;  %v893_v17 = vrot.slane %v892_v62, 4  ;;  %v979_v30 = vsel %vm978_vm8, %v835_v8, %v826_v2  ;;  %1107 = vmatprep.subr.mxu1 %v1712_v15  ;;  %v1066_v2 = vld [vmem:[%s1922_s18 + $0x40] sm:$0xff] }
 0x118   : > { %v900_v20 = vsel %vm391_vm1, %v803_v10, -inf  ;;  %v872_v26 = vsel %vm391_vm1, %v796_v11, -inf  ;;  %v868_v33 = vrot.slane %v867_v16, 2  ;;  %v861_v42 = vrot.slane %v860_v24, 1  ;;  %1108 = vmatpush1.msra.mxu1 %v1067_v57 }
 0x119   : > { %v628_v7 = vpop.permute.xlu1 %627  ;;  %v588_v18 = vpop.permute.xlu0 %587  ;;  %v901_v25 = vmax.f32 %v899_v6, %v900_v20  ;;  %v894_v34 = vmax.f32 %v892_v62, %v893_v17  ;;  %v981_v47 = vsel %vm980_vm9, %v844_v29, %v979_v30  ;;  %1109 = vmatprep.subr.mxu1 %v1712_v15  ;;  %vm988_vm5 = vcmask 1046534  }
 0x11a   : > { %vm708_vm7 = vcmp.gt.f32.partialorder %v628_v7, 0.0  ;;  %vm701_vm11 = vcmp.gt.f32.partialorder %v588_v18, 0.0  ;;  %v869_v51 = vmax.f32 %v867_v16, %v868_v33  ;;  %v983_v58 = vsel %vm982_vm10, %v853_v38, %v981_v47  ;;  %1110 = vmatpush1.msra.mxu1 %v1066_v2  ;;  %v1063_v33 = vld [vmem:[%s1922_s18 + $0x28] sm:$0xff] }
 0x11b   : > { %v1506_v23 = vpop.eup %1505  ;;  %v804_v27 = vsel %vm708_vm7, %v1942_v12, -inf  ;;  %v797_v31 = vsel %vm701_vm11, %v1937_v9, -inf  ;;  %v902_v35 = vrot.slane %v901_v25, 4  ;;  %v895_v21 = vrot.slane %v894_v34, 2  ;;  %1111 = vmatprep.subr.mxu1 %v1712_v15 }
 0x11c   : > { %1023 = vperm.xlu1 %1501, %v1506_v23   ;;  %v873_v36 = vsel %vm391_vm1, %v797_v31, -inf  ;;  %v908_v40 = vsel %vm391_vm1, %v804_v27, -inf  ;;  %v862_v63 = vmax.f32 %v860_v24, %v861_v42  ;;  %v870_v4 = vrot.slane %v869_v51, 1  ;;  %v1064_v24 = vld [vmem:[%s1922_s18 + $0x30] sm:$0xff]  ;;  %1112 = vmatpush1.msra.mxu1 %v1065_v14  ;;  %v1062_v42 = vld [vmem:[%s1922_s18 + $0x20] sm:$0xff] }
 0x11d   : > { %v595_v28 = vpop.permute.xlu1 %594  ;;  %v632_v37 = vpop.permute.xlu0 %631  ;;  %v874_v39 = vmax.f32 %v872_v26, %v873_v36  ;;  %v903_v43 = vmax.f32 %v901_v25, %v902_v35  ;;  %v896_v5 = vmax.f32 %v894_v34, %v895_v21  ;;  %vm990_vm6 = vcmask 1047559   ;;  %1113 = vmatprep.subr.mxu1 %v1712_v15 }
 0x11e   : > { %vm702_vm12 = vcmp.gt.f32.partialorder %v595_v28, 0.0  ;;  %vm709_vm13 = vcmp.gt.f32.partialorder %v632_v37, 0.0  ;;  %v985_v25 = vsel %vm984_vm15, %v862_v63, %v983_v58  ;;  %v871_v26 = vmax.f32 %v869_v51, %v870_v4  ;;  %1114 = vmatpush1.msra.mxu1 %v1064_v24  ;;  %v1061_v51 = vld [vmem:[%s1922_s18 + $0x18] sm:$0xff] }
 0x11f   : > { %v805_v44 = vsel %vm709_vm13, %v1937_v9, -inf  ;;  %v798_v45 = vsel %vm702_vm12, %v1942_v12, -inf  ;;  %v875_v48 = vrot.slane %v874_v39, 4  ;;  %v904_v54 = vrot.slane %v903_v43, 2  ;;  %1115 = vmatprep.subr.mxu1 %v1712_v15 }
 0x120   : > { %v909_v49 = vsel %vm391_vm1, %v805_v44, -inf  ;;  %v881_v56 = vsel %vm391_vm1, %v798_v45, -inf  ;;  %v897_v30 = vrot.slane %v896_v5, 1  ;;  %1116 = vmatpush1.msra.mxu1 %v1063_v33 }
 0x121   : > { %v639_v46 = vpop.permute.xlu1 %638  ;;  %v910_v52 = vmax.f32 %v908_v40, %v909_v49  ;;  %v599_v53 = vpop.permute.xlu0 %598  ;;  %v876_v55 = vmax.f32 %v874_v39, %v875_v48  ;;  %v905_v10 = vmax.f32 %v903_v43, %v904_v54  ;;  %v987_v43 = vsel %vm986_vm0, %v871_v26, %v985_v25  ;;  %1117 = vmatprep.subr.mxu1 %v1712_v15  ;;  %v1081_v25 = vld [vmem:[%s1922_s18 + $0xb8] sm:$0xff] }
 0x122   : > { %vm710_vm14 = vcmp.gt.f32.partialorder %v639_v46, 0.0  ;;  %vm703_vm2 = vcmp.gt.f32.partialorder %v599_v53, 0.0  ;;  %v898_v48 = vmax.f32 %v896_v5, %v897_v30  ;;  %1118 = vmatpush1.msra.mxu1 %v1062_v42  ;;  %v411_v30 = vld [vmem:[#allocation2 + $0x8] sm:$0xff] }
 0x123   : > { %v911_v59 = vrot.slane %v910_v52, 4  ;;  %v799_v60 = vsel %vm703_vm2, %v1937_v9, -inf  ;;  %v806_v61 = vsel %vm710_vm14, %v1942_v12, -inf  ;;  %v877_v0 = vrot.slane %v876_v55, 2  ;;  %1119 = vmatprep.subr.mxu1 %v1712_v15 }
 0x124   : > { %v882_v1 = vsel %vm391_vm1, %v799_v60, -inf  ;;  %v917_v13 = vsel %vm391_vm1, %v806_v61, -inf  ;;  %v906_v31 = vrot.slane %v905_v10, 1  ;;  %v816_v60 = vld [vmem:[#allocation3] sm:$0xff]  ;;  %1120 = vmatpush1.msra.mxu1 %v1061_v51 }
 0x125   : > { %v650_v62 = vpop.permute.xlu1 %649  ;;  %v912_v6 = vmax.f32 %v910_v52, %v911_v59  ;;  %v883_v7 = vmax.f32 %v881_v56, %v882_v1  ;;  %v643_v8 = vpop.permute.xlu0 %642  ;;  %v878_v11 = vmax.f32 %v876_v55, %v877_v0  ;;  %v1060_v59 = vld [vmem:[%s1922_s18 + $0x10] sm:$0xff]  ;;  %1121 = vmatprep.subr.mxu1 %v1712_v15 }
 0x126   : > { %vm712_vm3 = vcmp.gt.f32.partialorder %v650_v62, 0.0  ;;  %vm711_vm4 = vcmp.gt.f32.partialorder %v643_v8, 0.0  ;;  %v907_v49 = vmax.f32 %v905_v10, %v906_v31  ;;  %1122 = vmatpush1.msra.mxu1 %v1060_v59  ;;  %v1075_v59 = vld [vmem:[%s1922_s18 + $0x88] sm:$0xff] }
 0x127   : > { %v884_v16 = vrot.slane %v883_v7, 4  ;;  %v807_v17 = vsel %vm711_vm4, %v1937_v9, -inf  ;;  %v808_v18 = vsel %vm712_vm3, %v1942_v12, -inf  ;;  %v879_v20 = vrot.slane %v878_v11, 1  ;;  %1123 = vmatprep.subr.mxu1 %v1712_v15 }
 0x128   : > { %v913_v22 = vrot.slane %v912_v6, 2  ;;  %v918_v23 = vsel %vm391_vm1, %v807_v17, -inf  ;;  %v926_v32 = vsel %vm391_vm1, %v808_v18, -inf  ;;  %v1058_v18 = vld [vmem:[%s1922_s18] sm:$0xff] }
 0x129   : > { %v661_v19 = vpop.permute.xlu1 %660  ;;  %v885_v27 = vmax.f32 %v883_v7, %v884_v16  ;;  %v919_v28 = vmax.f32 %v917_v13, %v918_v23  ;;  %v654_v29 = vpop.permute.xlu0 %653  ;;  %v880_v39 = vmax.f32 %v878_v11, %v879_v20 }
 0x12a   : > { %vm714_vm7 = vcmp.gt.f32.partialorder %v661_v19, 0.0  ;;  %vm713_vm11 = vcmp.gt.f32.partialorder %v654_v29, 0.0  ;;  %v914_v40 = vmax.f32 %v912_v6, %v913_v22  ;;  %v1059_v6 = vld [vmem:[%s1922_s18 + $0x8] sm:$0xff] }
 0x12b   : > { %v886_v34 = vrot.slane %v885_v27, 2  ;;  %v920_v35 = vrot.slane %v919_v28, 4  ;;  %v809_v36 = vsel %vm713_vm11, %v1937_v9, -inf  ;;  %v810_v37 = vsel %vm714_vm7, %v1942_v12, -inf  ;;  %1124 = vmatpush1.msra.mxu1 %v1059_v6 }
 0x12c   : > { %v927_v41 = vsel %vm391_vm1, %v809_v36, -inf  ;;  %v935_v50 = vsel %vm391_vm1, %v810_v37, -inf  ;;  %v989_v56 = vsel %vm988_vm5, %v880_v39, %v987_v43  ;;  %v915_v57 = vrot.slane %v914_v40, 1  ;;  %1125 = vmatprep.subr.mxu1 %v1712_v15 }
 0x12d   : > { %v672_v38 = vpop.permute.xlu1 %671  ;;  %v887_v44 = vmax.f32 %v885_v27, %v886_v34  ;;  %v921_v45 = vmax.f32 %v919_v28, %v920_v35  ;;  %v928_v46 = vmax.f32 %v926_v32, %v927_v41  ;;  %v665_v47 = vpop.permute.xlu0 %664  ;;  %1126 = vmatpush1.msra.mxu1 %v1058_v18  ;;  %v1080_v34 = vld [vmem:[%s1922_s18 + $0xb0] sm:$0xff]  ;;  %v1079_v41 = vld [vmem:[%s1922_s18 + $0xa8] sm:$0xff] }
 0x12e   : > { %vm716_vm12 = vcmp.gt.f32.partialorder %v672_v38, 0.0  ;;  %vm715_vm13 = vcmp.gt.f32.partialorder %v665_v47, 0.0  ;;  %v916_v13 = vmax.f32 %v914_v40, %v915_v57  ;;  %1143 = vmatprep.subr.mxu1 %v1712_v15  ;;  %v410_v38 = vld [vmem:[#allocation2] sm:$0xff] }
 0x12f   : > { %v888_v21 = vrot.slane %v887_v44, 1  ;;  %v922_v52 = vrot.slane %v921_v45, 2  ;;  %v929_v53 = vrot.slane %v928_v46, 4  ;;  %v812_v54 = vsel %vm716_vm12, %v1942_v12, -inf  ;;  %1144 = vmatpush2.msra.mxu1 %v1081_v25 }
 0x130   : > { %v811_v58 = vsel %vm715_vm13, %v1937_v9, -inf  ;;  %v944_v4 = vsel %vm391_vm1, %v812_v54, -inf  ;;  %1145 = vmatprep.subr.mxu1 %v1712_v15 }
 0x131   : > { %v683_v55 = vpop.permute.xlu1 %682  ;;  %v889_v61 = vmax.f32 %v887_v44, %v888_v21  ;;  %v923_v62 = vmax.f32 %v921_v45, %v922_v52  ;;  %v930_v63 = vmax.f32 %v928_v46, %v929_v53  ;;  %v936_v0 = vsel %vm391_vm1, %v811_v58, -inf  ;;  %v676_v1 = vpop.permute.xlu0 %675  ;;  %1146 = vmatpush2.msra.mxu1 %v1080_v34  ;;  %v1077_v52 = vld [vmem:[%s1922_s18 + $0x98] sm:$0xff] }
 0x132   : > { %vm718_vm14 = vcmp.gt.f32.partialorder %v683_v55, 0.0  ;;  %v937_v2 = vmax.f32 %v935_v50, %v936_v0  ;;  %vm717_vm2 = vcmp.gt.f32.partialorder %v676_v1, 0.0  ;;  %1147 = vmatprep.subr.mxu1 %v1712_v15  ;;  %v1076_v55 = vld [vmem:[%s1922_s18 + $0x90] sm:$0xff] }
 0x133   : > { %v814_v5 = vsel %vm718_vm14, %v1942_v12, -inf  ;;  %v991_v7 = vsel %vm990_vm6, %v889_v61, %v989_v56  ;;  %v924_v8 = vrot.slane %v923_v62, 1  ;;  %v931_v10 = vrot.slane %v930_v63, 2  ;;  %1148 = vmatpush2.msra.mxu1 %v1079_v41 }
 0x134   : > { %v813_v11 = vsel %vm717_vm2, %v1937_v9, -inf  ;;  %v1001_v14 = vmax.f32 %v816_v60, %v991_v7  ;;  %v938_v16 = vrot.slane %v937_v2, 4  ;;  %v992_v12 = vsel %vm978_vm8, %v907_v49, %v898_v48  ;;  %v1078_v48 = vld [vmem:[%s1922_s18 + $0xa0] sm:$0xff]  ;;  %1149 = vmatprep.subr.mxu1 %v1712_v15 }
 0x135   : > { %v945_v17 = vsel %vm391_vm1, %v813_v11, -inf  ;;  %v932_v19 = vmax.f32 %v930_v63, %v931_v10  ;;  %v687_v22 = vpop.permute.xlu0 %686  ;;  %v953_v24 = vsel %vm391_vm1, %v814_v5, -inf  ;;  %v925_v26 = vmax.f32 %v923_v62, %v924_v8  ;;  %1150 = vmatpush2.msra.mxu1 %v1078_v48  ;;  %v817_v62 = vld [vmem:[#allocation3 + $0x8] sm:$0xff]  ;;  %v1074_v5 = vld [vmem:[%s1922_s18 + $0x80] sm:$0xff] }
 0x136   : > { %v946_v20 = vmax.f32 %v944_v4, %v945_v17  ;;  %1003 = vst.msk [vmem:[#allocation3] sm:$0xff] %vm391_vm1, %v1001_v14  ;;  %v939_v23 = vmax.f32 %v937_v2, %v938_v16  ;;  %vm719_vm3 = vcmp.gt.f32.partialorder %v687_v22, 0.0  ;;  %v993_v31 = vsel %vm980_vm9, %v916_v13, %v992_v12  ;;  %1151 = vmatprep.subr.mxu1 %v1712_v15  ;;  %v1044_v2 = vld [vmem:[#allocation9] sm:$0xff]  ;;  %v1045_v16 = vld [vmem:[#allocation9 + $0x8] sm:$0xff] }
 0x137   : > { %v933_v27 = vrot.slane %v932_v19, 1  ;;  %v815_v29 = vsel %vm719_vm3, %v1937_v9, -inf  ;;  %v994_v42 = vsel %vm982_vm10, %v925_v26, %v993_v31  ;;  %1152 = vmatpush2.msra.mxu1 %v1077_v52  ;;  %v1046_v4 = vmax.f32 %v1044_v2, %v1932_v3  ;;  %v1381_v26 = vld [vmem:[%s348_s14] ss:$0 sm:$0xff] }
 0x138   : > { %v947_v28 = vrot.slane %v946_v20, 4  ;;  %v940_v32 = vrot.slane %v939_v23, 2  ;;  %v954_v33 = vsel %vm391_vm1, %v815_v29, -inf  ;;  %1153 = vmatprep.subr.mxu1 %v1712_v15  ;;  %v1047_v18 = vmax.f32 %v1045_v16, %v1932_v3 }
 0x139   : > { %v955_v36 = vmax.f32 %v953_v24, %v954_v33  ;;  %v934_v39 = vmax.f32 %v932_v19, %v933_v27  ;;  %1154 = vmatpush2.msra.mxu1 %v1076_v55  ;;  %1382 = vmatprep.mubr.msk.f32.mxu1 %vm391_vm1, %v1046_v4 }
 0x13a   : > { %v948_v35 = vmax.f32 %v946_v20, %v947_v28  ;;  %v1403_v37 = vpop.f32.mrf.mxu0  ;;  %v941_v40 = vmax.f32 %v939_v23, %v940_v32  ;;  %1155 = vmatprep.subr.mxu1 %v1712_v15 }
 0x13b   : > { %v495_v9 = vadd.f32 %v1403_v37, %v411_v30  ;;  %v956_v44 = vrot.slane %v955_v36, 4  ;;  %v995_v51 = vsel %vm984_vm15, %v934_v39, %v994_v42  ;;  %1156 = vmatpush2.msra.mxu1 %v1075_v59 }
 0x13c   : > { %v949_v43 = vrot.slane %v948_v35, 2  ;;  %v485_v45 = vpop.f32.mrf.mxu0  ;;  %v942_v46 = vrot.slane %v941_v40, 1  ;;  %1157 = vmatprep.subr.mxu1 %v1712_v15 }
 0x13d   : > { %498 = vst.msk [vmem:[#allocation2 + $0x8] sm:$0xff] %vm391_vm1, %v495_v9  ;;  %v494_v47 = vadd.f32 %v485_v45, %v410_v38  ;;  %v957_v50 = vmax.f32 %v955_v36, %v956_v44  ;;  %1158 = vmatpush2.msra.mxu1 %v1074_v5  ;;  %v1030_v7 = vld [vmem:[#allocation3] sm:$0xff] }
 0x13e   : > { %v950_v49 = vmax.f32 %v948_v35, %v949_v43  ;;  %v943_v21 = vmax.f32 %v941_v40, %v942_v46 }
 0x13f   : > { %497 = vst.msk [vmem:[#allocation2] sm:$0xff] %vm391_vm1, %v494_v47  ;;  %v958_v54 = vrot.slane %v957_v50, 2 }
 0x140   : > { %v951_v53 = vrot.slane %v950_v49, 1  ;;  %v996_v56 = vsel %vm986_vm0, %v943_v21, %v995_v51 }
 0x141   : > { %v959_v58 = vmax.f32 %v957_v50, %v958_v54 }
 0x142   : > { %v952_v57 = vmax.f32 %v950_v49, %v951_v53 }
 0x143   : > { %v960_v60 = vrot.slane %v959_v58, 1 }
 0x144   : > { %v997_v61 = vsel %vm988_vm5, %v952_v57, %v996_v56  ;;  %v1015_v19 = vld [vmem:[#allocation2 + $0x8] sm:$0xff] }
 0x145   : > { %v961_v63 = vmax.f32 %v959_v58, %v960_v60 }
 0x146   : > { %v1014_v14 = vld [vmem:[#allocation2] sm:$0xff] }
 0x147   : > { %v998_v0 = vsel %vm990_vm6, %v961_v63, %v997_v61 }
 0x148   : > { %v1002_v1 = vmax.f32 %v817_v62, %v998_v0 }
 0x14a   : > { %1004 = vst.msk [vmem:[#allocation3 + $0x8] sm:$0xff] %vm391_vm1, %v1002_v1 }
 0x151   : > { %v1031_v15 = vld [vmem:[#allocation3 + $0x8] sm:$0xff] }
 0x184   : > { %v1036_v6 = vpop.permute.xlu1 %1035 }
 0x185   : > { %vm1040_vm8 = vcmp.eq.s32.totalorder %v1036_v6, 1 }
 0x186   : > { %v1042_v8 = vsel %vm1040_vm8, %v1030_v7, 0.0 }
 0x187   : > { %1050 = vrot.lane.b32.xlu0 %v1042_v8, %s1715_s24 }
 0x189   : > { %v1039_v10 = vpop.permute.xlu0 %1038 }
 0x18a   : > { %vm1041_vm9 = vcmp.eq.s32.totalorder %v1039_v10, 1 }
 0x18b   : > { %v1043_v11 = vsel %vm1041_vm9, %v1031_v15, 0.0 }
 0x18c   : > { %1052 = vrot.lane.b32.xlu1 %v1043_v11, %s1715_s24 }
 0x192   : > { %v1019_v13 = vpop.permute.xlu1 %1018 }
 0x193   : > { %v1026_v17 = vmul.f32 %v1019_v13, %v1014_v14 }
 0x197   : > { %v1024_v12 = vpop.permute.xlu1 %1023 }
 0x198   : > { %v1027_v23 = vmul.f32 %v1024_v12, %v1015_v19 }
 0x1f9   : > { %v1051_v20 = vpop.permute.xlu0 %1050 }
 0x1fa   : > { %v1056_v22 = vsel %vm391_vm1, %v1026_v17, %v1051_v20 }
 0x1fb   : > { %1160 = vmatmul.mubr.f32.vlgmr.msra.gmra.mxu1 %v1056_v22 }
 0x1fc   : > { %1383 = vmatprep.mubr.msk.f32.mxu1 %vm391_vm1, %v1047_v18 }
 0x1fe   : > { %v1053_v24 = vpop.permute.xlu1 %1052 }
 0x1ff   : > { %v1057_v25 = vsel %vm391_vm1, %v1027_v23, %v1053_v24 }
 0x200   : > { %1165 = vmatmul.mubr.f32.gmra.mxu1 %v1057_v25 }
 0x2bb   : > { %v1161_v27 = vpop.f32.mrf.mxu1 }
 0x2bc   : > { %v1162_v28 = vadd.f32 %v1381_v26, %v1161_v27 }
 0x2bd   : > { %v1163_v29 = vpop.f32.mrf.mxu1 }
 0x2be   : > { %1170 = vst [vmem:[%s382_s26] sm:$0xff] %v1162_v28 }
 0x2bf   : > { %1178 = sbr.rel (!%p2180_p6) target bundleno = 716 (0x2cc), region = 72 }
 0x2c0   : > { %v1166_v3 = vpop.f32.mrf.mxu1 }
 0x2c1   : > { %v1167_v30 = vadd.f32 %v1381_v26, %v1166_v3 }
 0x2c2   : > { %v1168_v31 = vpop.f32.mrf.mxu1 }
 0x2c3   : > { %1171 = vst [vmem:[%s382_s26 + $0x8] sm:$0xff] %v1167_v30 }
 0x2c5   : > { %v1214_v32 = vld [vmem:[%s382_s26] sm:$0xff] }
 0x2c6   : > { %1215 = vst [vmem:[%s1183_s25] sm:$0xff] %v1214_v32 }
 0x2ca   : > { %v1216_v33 = vld [vmem:[%s382_s26 + $0x8] sm:$0xff] }
 0x2cb   : > { %1217 = vst [vmem:[%s1183_s25 + $0x10] sm:$0xff] %v1216_v33 }
 0x2cc PF: > { %s22_s23 = sadd.s32 1, %s1701_s23   ;;  %s2181_s6 = sld [smem:[#allocation18_spill]] }
 0x2cd   : > { %p19_p13 = scmp.ge.s32.totalorder %s22_s23, 4   ;;  %s2182_s28 = sld [smem:[#allocation17_spill]] }
 0x2ce   : > { %s2183_s18 = smov %s1685_s19  ;;  %s2184_s19 = smov %s1689_s20 }
 0x2cf   : > { %s2186_s21 = smov %s1697_s22  ;;  %21 = sbr.rel (!%p19_p13) target bundleno = 10 (0xa), region = 160 }
 0x2d2   : > { %s2185_s20 = smov %s2181_s6 }
 0x2d3   : > { %s2187_s22 = smov %s2182_s28 }
 0x2d4   :  { %1233 = vsyncpa [#allocation6], 1 }
 0x2d5   :  { %1235 = vsyncpa [#allocation6 + $0x1], 1 }
 0x2d6   :  { %1236 = vsyncpa [#allocation8], 1 }
 0x2d7   :  { %1237 = vsyncpa [#allocation11], 1 }
 0x2d8   :  { %1239 = vsyncpa [#allocation11 + $0x1], 1 }

</bundles_post_ra>
